<compile_context>
chip_gen: v7x
topology: tpu7x:2x2x1
jax: 0.10.0
libtpu: 0.0.40
codegen_flags: <defaults>
</compile_context>

<pallas_src>
import math

import jax
import jax.numpy as jnp
import numpy as np
from jax.experimental import pallas as pl
from jax.experimental.pallas import tpu as pltpu

B, N, D = 2, 8, 32          # batch, seq_len, d_model
H = 4                       # nhead
DH = D // H                 # head_dim
F = 64                      # dim_feedforward
LN_EPS = 1e-6               # layer_norm_eps
GN_EPS = 1e-6               # group_norm eps inside MultiScaleRetention


def retnet_layer_kernel(
    x_ref,        # (B, N, D)            activation block
    w_ref,        # (3D + F, 4D)         packed weight slab
    c_ref,        # (8 + 3R, 4D)         packed biases + xpos trig slab
    decay_ref,    # (H, R, R)            per-head causal decay, block-diag over batch
    out_ref,      # (B, N, D)
):
    BB, n_tok, d = x_ref.shape
    R = BB * n_tok
    x = x_ref[...].reshape(R, d)

    # ---- static views into the packed slabs (row offsets are 8-aligned, every
    # ---- piece starts at lane 0) ----
    wqkvg = w_ref[0:D, :]                     # (D, 4D)  fused q|k|v|gate projection
    ow = w_ref[D:2 * D, 0:D]                  # (D, D)   retention out-proj
    w1 = w_ref[2 * D:3 * D, 0:F]              # (D, F)   linear1 (norm2 affine folded)
    w2 = w_ref[3 * D:3 * D + F, 0:D]          # (F, D)   linear2

    bqkvg = c_ref[0:1, :]                     # (1, 4D)  fused proj bias (norm1 folded)
    ob = c_ref[1:2, 0:D]                      # (1, D)   out_proj bias
    b1 = c_ref[2:3, 0:F]                      # (1, F)   linear1 bias (norm2 folded)
    b2 = c_ref[3:4, 0:D]                      # (1, D)   linear2 bias
    cos_t = c_ref[8:8 + R, :]                 # (R, 4D)  xpos cos (1 over v|g lanes)
    sin_e = c_ref[8 + R:8 + 2 * R, :]         # (R, 4D)  even-lane sign-folded sin
    sin_o = c_ref[8 + 2 * R:8 + 3 * R, :]     # (R, 4D)  odd-lane sign-folded sin

    def layer_norm(h):                        # affine folded into next matmul on host
        mu = jnp.mean(h, axis=-1, keepdims=True)
        var = jnp.mean((h - mu) ** 2, axis=-1, keepdims=True)
        return (h - mu) * jax.lax.rsqrt(var + LN_EPS)

    def silu(h):                              # "swish" activation
        return h * jax.nn.sigmoid(h)

    # ------------------- retention block (pre-norm) -------------------
    xn = layer_norm(x)

    # One lane-dense fused projection: (R, 32) @ (32, 128) + (1, 128).
    proj = jnp.dot(xn, wqkvg, preferred_element_type=jnp.float32) + bqkvg   # (R, 4D)

    # xpos theta-shift on the full 128-lane slab:
    #   y = x*cos + roll(x, -1)*sin_even + roll(x, +1)*sin_odd
    # multiply_by_i (pair swap j <-> j^1 with alternating sign) is folded into the
    # even/odd sin tables on the host; v|g lanes have cos=1, sin=0 so they pass
    # through unchanged, and the roll wrap-around lanes always see sin=0.
    roll_fwd = pltpu.roll(proj, shift=4 * D - 1, axis=1)   # lane j <- proj[:, j+1]
    roll_bwd = pltpu.roll(proj, shift=1, axis=1)           # lane j <- proj[:, j-1]
    proj = proj * cos_t + roll_fwd * sin_e + roll_bwd * sin_o

    q = proj[:, 0 * D:1 * D]
    k = proj[:, 1 * D:2 * D]      # already scaled by 1/sqrt(head_dim) on host
    v = proj[:, 2 * D:3 * D]
    g = proj[:, 3 * D:4 * D]

    # Batched (over heads) decayed retention: one sim matmul, one decay multiply,
    # one sim@v matmul, one batched GroupNorm — no per-head Python loop.
    qh = jnp.transpose(q.reshape(R, H, DH), (1, 0, 2))              # (H, R, DH)
    kh = jnp.transpose(k.reshape(R, H, DH), (1, 0, 2))
    vh = jnp.transpose(v.reshape(R, H, DH), (1, 0, 2))
    sim = jnp.einsum('hnd,hsd->hns', qh, kh,
                     preferred_element_type=jnp.float32)            # (H, R, R)
    sim = sim * decay_ref[...]
    ret = jnp.einsum('hns,hsd->hnd', sim, vh,
                     preferred_element_type=jnp.float32)            # (H, R, DH)

    # GroupNorm(num_groups=H, num_channels=H, affine=False) on (b n) h d
    # == per-(token, head) normalization over head_dim.
    mu = jnp.mean(ret, axis=-1, keepdims=True)
    var = jnp.mean((ret - mu) ** 2, axis=-1, keepdims=True)
    ret = (ret - mu) * jax.lax.rsqrt(var + GN_EPS)
    ret = jnp.transpose(ret, (1, 0, 2)).reshape(R, D)               # (R, D)

    gate = silu(g)
    ret_out = jnp.dot(ret * gate, ow, preferred_element_type=jnp.float32) + ob
    x = x + ret_out                                # residual 1 (dropout = identity)

    # ------------------- feedforward block (pre-norm) -------------------
    xn2 = layer_norm(x)
    h1 = silu(jnp.dot(xn2, w1, preferred_element_type=jnp.float32) + b1)
    ff = jnp.dot(h1, w2, preferred_element_type=jnp.float32) + b2
    x = x + ff                                     # residual 2

    out_ref[...] = x.reshape(BB, n_tok, d)


def retnet_decoder_layer(x, wslab, cslab, decay):
    Bx, Nx, Dx = x.shape

    def full_spec(a):
        nd = a.ndim
        return pl.BlockSpec(a.shape, lambda i, _nd=nd: (0,) * _nd)

    return pl.pallas_call(
        retnet_layer_kernel,
        out_shape=jax.ShapeDtypeStruct((Bx, Nx, Dx), jnp.float32),
        grid=(1,),
        in_specs=[full_spec(x), full_spec(wslab), full_spec(cslab), full_spec(decay)],
        out_specs=pl.BlockSpec((Bx, Nx, Dx), lambda i: (0, 0, 0)),
        compiler_params=pltpu.CompilerParams(dimension_semantics=("arbitrary",)),
    )(x, wslab, cslab, decay)


# ----------------------- host-side constant / packing builders -----------------------
def build_decay_blockdiag(n_tok, n_blocks):
    """Per-head decay mask gamma**|i-j| (causal), block-diagonal over the collapsed
    batch so batch elements never mix."""
    gammas = 1.0 - jnp.exp(jnp.linspace(math.log(1 / 32), math.log(1 / 512), H))
    idx = jnp.arange(n_tok)
    dist = jnp.abs(idx[:, None] - idx[None, :]).astype(jnp.float32)
    causal = idx[:, None] >= idx[None, :]
    dec = jnp.where(causal[None], gammas[:, None, None] ** dist[None], 0.0)
    dec = dec.astype(jnp.float32)                                   # (H, n, n)
    R = n_tok * n_blocks
    blk = jnp.zeros((H, R, R), jnp.float32)
    for b in range(n_blocks):
        s = b * n_tok
        blk = blk.at[:, s:s + n_tok, s:s + n_tok].set(dec)
    return blk


def build_trig_tables(n_tok, n_blocks):
    """xpos tables padded to the full 4D projection lanes.

    Returns (cos, sin_even, sin_odd), each (n_blocks*n_tok, 4D):
      * q|k lanes carry the real tables, v|g lanes get cos=1 / sin=0,
      * the multiply_by_i alternating sign is folded in, and the sin table is split
        by lane parity so the kernel needs no iota / select.
    """
    thetas = 10000.0 ** (-jnp.linspace(0.0, 1.0, DH // 2))
    thetas = jnp.repeat(thetas, 2)                                   # (DH,)
    angles = jnp.arange(n_tok, dtype=jnp.float32)[:, None] * thetas[None, :]
    cos_h = jnp.tile(jnp.cos(angles), (1, H))                        # (n, D)
    sin_h = jnp.tile(jnp.sin(angles), (1, H))                        # (n, D)
    even = jnp.asarray((np.arange(D) % 2 == 0).astype(np.float32))[None, :]
    sin_e_h = -sin_h * even                 # even lanes: -sin,  odd lanes: 0
    sin_o_h = sin_h * (1.0 - even)          # odd lanes:  +sin,  even lanes: 0
    ones = jnp.ones((n_tok, D), jnp.float32)
    zeros = jnp.zeros((n_tok, D), jnp.float32)
    cos_f = jnp.concatenate([cos_h, cos_h, ones, ones], axis=1)      # (n, 4D)
    sin_e = jnp.concatenate([sin_e_h, sin_e_h, zeros, zeros], axis=1)
    sin_o = jnp.concatenate([sin_o_h, sin_o_h, zeros, zeros], axis=1)
    if n_blocks > 1:
        cos_f = jnp.tile(cos_f, (n_blocks, 1))
        sin_e = jnp.tile(sin_e, (n_blocks, 1))
        sin_o = jnp.tile(sin_o, (n_blocks, 1))
    return cos_f, sin_e, sin_o


def pack_params(raw_params, n_tok, n_blocks):
    """Pack all weights into one (3D+F, 4D) slab and all small constants into one
    (8 + 3R, 4D) slab.  LayerNorm affines and the retention key scale are folded in."""
    (n1w, n1b, qw, qb, kw, kb, vw, vb, gw, gb, ow, ob,
     n2w, n2b, w1, b1, w2, b2) = raw_params
    k_scale = 1.0 / math.sqrt(DH)

    # fused q|k|v|gate projection, key scale folded into the k columns
    wqkvg = jnp.concatenate([qw, kw * k_scale, vw, gw], axis=1)      # (D, 4D)
    bqkvg = jnp.concatenate([qb, kb * k_scale, vb, gb], axis=1)      # (1, 4D)

    # fold LayerNorm affines into downstream matmuls:
    #   (xhat*w + b) @ W + c == xhat @ (diag(w) W) + (b @ W + c)
    bqkvg = n1b @ wqkvg + bqkvg
    wqkvg = wqkvg * n1w.reshape(D, 1)
    b1f = n2b @ w1 + b1
    w1f = w1 * n2w.reshape(D, 1)

    # ---- weight slab (3D+F, 4D) = (160, 128); every piece starts at lane 0,
    # ---- row offsets are multiples of 8.
    wslab = jnp.zeros((3 * D + F, 4 * D), jnp.float32)
    wslab = wslab.at[0:D, :].set(wqkvg)
    wslab = wslab.at[D:2 * D, 0:D].set(ow)
    wslab = wslab.at[2 * D:3 * D, 0:F].set(w1f)
    wslab = wslab.at[3 * D:3 * D + F, 0:D].set(w2)

    # ---- constant slab (8 + 3R, 4D): one bias per row + the xpos trig tables.
    R = n_tok * n_blocks
    cos_f, sin_e, sin_o = build_trig_tables(n_tok, n_blocks)
    cslab = jnp.zeros((8 + 3 * R, 4 * D), jnp.float32)
    cslab = cslab.at[0, :].set(bqkvg[0])
    cslab = cslab.at[1, 0:D].set(ob[0])
    cslab = cslab.at[2, 0:F].set(b1f[0])
    cslab = cslab.at[3, 0:D].set(b2[0])
    cslab = cslab.at[8:8 + R, :].set(cos_f)
    cslab = cslab.at[8 + R:8 + 2 * R, :].set(sin_e)
    cslab = cslab.at[8 + 2 * R:8 + 3 * R, :].set(sin_o)
    return wslab, cslab


# ----------------------- pure-JAX reference (unfused) -----------------------
def reference_forward(x, raw_params):
    (n1w, n1b, qw, qb, kw, kb, vw, vb, gw, gb, ow, ob,
     n2w, n2b, w1, b1, w2, b2) = raw_params

    def ln(h, w, b):
        mu = h.mean(-1, keepdims=True)
        var = ((h - mu) ** 2).mean(-1, keepdims=True)
        return (h - mu) / jnp.sqrt(var + LN_EPS) * w + b

    silu = lambda t: t * jax.nn.sigmoid(t)

    def mul_i(t):   # multiply_by_i: out[2p] = -x[2p+1], out[2p+1] = x[2p]
        tp = t.reshape(t.shape[:-1] + (DH // 2, 2))
        return jnp.stack([-tp[..., 1], tp[..., 0]], axis=-1).reshape(t.shape)

    xn = ln(x, n1w, n1b)
    q = xn @ qw + qb
    k = xn @ kw + kb
    v = xn @ vw + vb

    qh = q.reshape(B, N, H, DH).transpose(0, 2, 1, 3)
    kh = k.reshape(B, N, H, DH).transpose(0, 2, 1, 3)
    vh = v.reshape(B, N, H, DH).transpose(0, 2, 1, 3)

    thetas = 10000.0 ** (-jnp.linspace(0.0, 1.0, DH // 2))
    thetas = jnp.repeat(thetas, 2)
    angles = jnp.arange(N, dtype=jnp.float32)[:, None] * thetas[None, :]
    cos = jnp.cos(angles)[None, None]
    sin = jnp.sin(angles)[None, None]
    qh = qh * cos + mul_i(qh) * sin
    kh = kh * cos + mul_i(kh) * sin
    kh = kh / math.sqrt(DH)

    gammas = 1.0 - jnp.exp(jnp.linspace(math.log(1 / 32), math.log(1 / 512), H))
    idx = jnp.arange(N)
    dist = jnp.abs(idx[:, None] - idx[None, :]).astype(jnp.float32)
    causal = idx[:, None] >= idx[None, :]
    decay = jnp.where(causal[None], gammas[:, None, None] ** dist[None], 0.0)

    sim = jnp.einsum("bhnd,bhsd->bhns", qh, kh) * decay[None]
    ret = jnp.einsum("bhns,bhsd->bhnd", sim, vh)
    mu = ret.mean(-1, keepdims=True)
    var = ((ret - mu) ** 2).mean(-1, keepdims=True)
    ret = (ret - mu) / jnp.sqrt(var + GN_EPS)
    ret = ret.transpose(0, 2, 1, 3).reshape(B, N, D)

    gate = silu(xn @ gw + gb)
    x = x + (ret * gate) @ ow + ob
    xn2 = ln(x, n2w, n2b)
    x = x + silu(xn2 @ w1 + b1) @ w2 + b2
    return x


def _xavier_t(key, out_f, in_f):
    std = math.sqrt(2.0 / (in_f + out_f))
    w = std * jax.random.normal(key, (out_f, in_f), jnp.float32)
    return w.T                                     # (in, out)


if __name__ == "__main__":
    key = jax.random.PRNGKey(0)
    keys = jax.random.split(key, 8)
    x = jax.random.normal(keys[0], (B, N, D), jnp.float32)

    # Parameters (deterministic: xavier-normal weights / zero biases, LayerNorm
    # weight=1 bias=0 — matching the module's _reset_parameters).
    n1w = jnp.ones((1, D), jnp.float32); n1b = jnp.zeros((1, D), jnp.float32)
    n2w = jnp.ones((1, D), jnp.float32); n2b = jnp.zeros((1, D), jnp.float32)
    qw = _xavier_t(keys[1], D, D); qb = jnp.zeros((1, D), jnp.float32)
    kw = _xavier_t(keys[2], D, D); kb = jnp.zeros((1, D), jnp.float32)
    vw = _xavier_t(keys[3], D, D); vb = jnp.zeros((1, D), jnp.float32)
    gw = _xavier_t(keys[4], D, D); gb = jnp.zeros((1, D), jnp.float32)
    ow = _xavier_t(keys[5], D, D); ob = jnp.zeros((1, D), jnp.float32)
    w1 = _xavier_t(keys[6], F, D); b1 = jnp.zeros((1, F), jnp.float32)
    w2 = _xavier_t(keys[7], D, F); b2 = jnp.zeros((1, D), jnp.float32)
    raw_params = (n1w, n1b, qw, qb, kw, kb, vw, vb, gw, gb, ow, ob,
                  n2w, n2b, w1, b1, w2, b2)

    wslab, cslab = pack_params(raw_params, N, B)
    decay = build_decay_blockdiag(N, B)

    out = jax.block_until_ready(retnet_decoder_layer(x, wslab, cslab, decay))

    # ---- reference check ----
    ref = reference_forward(x, raw_params)
    np.testing.assert_allclose(np.asarray(out), np.asarray(ref),
                               rtol=1e-3, atol=1e-3)
    print("KERNEL_OK")
</pallas_src>

<mosaic_0001>
module attributes {stable_mosaic.version = 11 : i64} {
  func.func @retnet_layer_kernel(%arg0: i32, %arg1: memref<2x8x32xf32, #tpu.memory_space<vmem>>, %arg2: memref<160x128xf32, #tpu.memory_space<vmem>>, %arg3: memref<56x128xf32, #tpu.memory_space<vmem>>, %arg4: memref<4x16x16xf32, #tpu.memory_space<vmem>>, %arg5: memref<2x8x32xf32, #tpu.memory_space<vmem>>) attributes {dimension_semantics = [#tpu.dimension_semantics<arbitrary>], iteration_bounds = array<i64: 1>, scalar_prefetch = 0 : i64, scratch_operands = 0 : i64, tpu.core_type = #tpu.core_type<tc>, window_params = [{pipeline_mode = #tpu.pipeline_mode<synchronous>, transform_indices = @transform_0, window_bounds = array<i64: 2, 8, 32>}, {pipeline_mode = #tpu.pipeline_mode<synchronous>, transform_indices = @transform_1, window_bounds = array<i64: 160, 128>}, {pipeline_mode = #tpu.pipeline_mode<synchronous>, transform_indices = @transform_2, window_bounds = array<i64: 56, 128>}, {pipeline_mode = #tpu.pipeline_mode<synchronous>, transform_indices = @transform_3, window_bounds = array<i64: 4, 16, 16>}, {pipeline_mode = #tpu.pipeline_mode<synchronous>, transform_indices = @transform_4, window_bounds = array<i64: 2, 8, 32>}]} {
    %c0 = arith.constant 0 : index
    %c0_0 = arith.constant 0 : index
    %c0_1 = arith.constant 0 : index
    %0 = vector.load %arg1[%c0, %c0_0, %c0_1] : memref<2x8x32xf32, #tpu.memory_space<vmem>>, vector<2x8x32xf32>
    %1 = vector.shape_cast %0 : vector<2x8x32xf32> to vector<16x32xf32>
    %c0_2 = arith.constant 0 : index
    %c0_3 = arith.constant 0 : index
    %2 = vector.load %arg2[%c0_2, %c0_3] : memref<160x128xf32, #tpu.memory_space<vmem>>, vector<32x128xf32>
    %c32 = arith.constant 32 : index
    %c0_4 = arith.constant 0 : index
    %3 = vector.load %arg2[%c32, %c0_4] : memref<160x128xf32, #tpu.memory_space<vmem>>, vector<32x32xf32>
    %c64 = arith.constant 64 : index
    %c0_5 = arith.constant 0 : index
    %4 = vector.load %arg2[%c64, %c0_5] : memref<160x128xf32, #tpu.memory_space<vmem>>, vector<32x64xf32>
    %c96 = arith.constant 96 : index
    %c0_6 = arith.constant 0 : index
    %5 = vector.load %arg2[%c96, %c0_6] : memref<160x128xf32, #tpu.memory_space<vmem>>, vector<64x32xf32>
    %c0_7 = arith.constant 0 : index
    %c0_8 = arith.constant 0 : index
    %6 = vector.load %arg3[%c0_7, %c0_8] : memref<56x128xf32, #tpu.memory_space<vmem>>, vector<1x128xf32>
    %c1 = arith.constant 1 : index
    %c0_9 = arith.constant 0 : index
    %7 = vector.load %arg3[%c1, %c0_9] : memref<56x128xf32, #tpu.memory_space<vmem>>, vector<1x32xf32>
    %c2 = arith.constant 2 : index
    %c0_10 = arith.constant 0 : index
    %8 = vector.load %arg3[%c2, %c0_10] : memref<56x128xf32, #tpu.memory_space<vmem>>, vector<1x64xf32>
    %c3 = arith.constant 3 : index
    %c0_11 = arith.constant 0 : index
    %9 = vector.load %arg3[%c3, %c0_11] : memref<56x128xf32, #tpu.memory_space<vmem>>, vector<1x32xf32>
    %c8 = arith.constant 8 : index
    %c0_12 = arith.constant 0 : index
    %10 = vector.load %arg3[%c8, %c0_12] : memref<56x128xf32, #tpu.memory_space<vmem>>, vector<16x128xf32>
    %c24 = arith.constant 24 : index
    %c0_13 = arith.constant 0 : index
    %11 = vector.load %arg3[%c24, %c0_13] : memref<56x128xf32, #tpu.memory_space<vmem>>, vector<16x128xf32>
    %c40 = arith.constant 40 : index
    %c0_14 = arith.constant 0 : index
    %12 = vector.load %arg3[%c40, %c0_14] : memref<56x128xf32, #tpu.memory_space<vmem>>, vector<16x128xf32>
    %cst = arith.constant dense<0.000000e+00> : vector<16xf32>
    %13 = vector.multi_reduction <add>, %1, %cst [1] : vector<16x32xf32> to vector<16xf32>
    %14 = vector.shape_cast %13 : vector<16xf32> to vector<16x1xf32>
    %cst_15 = arith.constant 3.200000e+01 : f32
    %15 = vector.broadcast %cst_15 : f32 to vector<16x1xf32>
    %16 = arith.divf %14, %15 : vector<16x1xf32>
    %17 = vector.broadcast %16 : vector<16x1xf32> to vector<16x32xf32>
    %18 = arith.subf %1, %17 : vector<16x32xf32>
    %19 = arith.mulf %18, %18 : vector<16x32xf32>
    %cst_16 = arith.constant dense<0.000000e+00> : vector<16xf32>
    %20 = vector.multi_reduction <add>, %19, %cst_16 [1] : vector<16x32xf32> to vector<16xf32>
    %21 = vector.shape_cast %20 : vector<16xf32> to vector<16x1xf32>
    %cst_17 = arith.constant 3.200000e+01 : f32
    %22 = vector.broadcast %cst_17 : f32 to vector<16x1xf32>
    %23 = arith.divf %21, %22 : vector<16x1xf32>
    %24 = vector.broadcast %16 : vector<16x1xf32> to vector<16x32xf32>
    %25 = arith.subf %1, %24 : vector<16x32xf32>
    %cst_18 = arith.constant 9.99999997E-7 : f32
    %26 = vector.broadcast %cst_18 : f32 to vector<16x1xf32>
    %27 = arith.addf %23, %26 : vector<16x1xf32>
    %28 = math.rsqrt %27 : vector<16x1xf32>
    %29 = vector.broadcast %28 : vector<16x1xf32> to vector<16x32xf32>
    %30 = arith.mulf %25, %29 : vector<16x32xf32>
    %cst_19 = arith.constant dense<0.000000e+00> : vector<16x128xf32>
    %31 = tpu.matmul %30, %2, %cst_19 {dimension_numbers = #tpu.dot_dimension_numbers<[1], [0], [0], [1], [0, 0, 1, 1], [], []>} : vector<16x32xf32>, vector<32x128xf32>, vector<16x128xf32> -> vector<16x128xf32>
    %32 = vector.broadcast %6 : vector<1x128xf32> to vector<16x128xf32>
    %33 = arith.addf %31, %32 : vector<16x128xf32>
    %c127_i32 = arith.constant 127 : i32
    %34 = tpu.dynamic_rotate %33 by %c127_i32 dim 1 : vector<16x128xf32>, i32 -> vector<16x128xf32>
    %c1_i32 = arith.constant 1 : i32
    %35 = tpu.dynamic_rotate %33 by %c1_i32 dim 1 : vector<16x128xf32>, i32 -> vector<16x128xf32>
    %36 = arith.mulf %33, %10 : vector<16x128xf32>
    %37 = arith.mulf %34, %11 : vector<16x128xf32>
    %38 = arith.addf %36, %37 : vector<16x128xf32>
    %39 = arith.mulf %35, %12 : vector<16x128xf32>
    %40 = arith.addf %38, %39 : vector<16x128xf32>
    %41 = vector.extract_strided_slice %40 {offsets = [0, 0], sizes = [16, 32], strides = [1, 1]} : vector<16x128xf32> to vector<16x32xf32>
    %42 = vector.extract_strided_slice %40 {offsets = [0, 32], sizes = [16, 32], strides = [1, 1]} : vector<16x128xf32> to vector<16x32xf32>
    %43 = vector.extract_strided_slice %40 {offsets = [0, 64], sizes = [16, 32], strides = [1, 1]} : vector<16x128xf32> to vector<16x32xf32>
    %44 = vector.extract_strided_slice %40 {offsets = [0, 96], sizes = [16, 32], strides = [1, 1]} : vector<16x128xf32> to vector<16x32xf32>
    %45 = vector.shape_cast %41 : vector<16x32xf32> to vector<16x4x8xf32>
    %46 = tpu.transpose %45, [1, 0, 2] : vector<16x4x8xf32> -> vector<4x16x8xf32>
    %47 = vector.shape_cast %42 : vector<16x32xf32> to vector<16x4x8xf32>
    %48 = tpu.transpose %47, [1, 0, 2] : vector<16x4x8xf32> -> vector<4x16x8xf32>
    %49 = vector.shape_cast %43 : vector<16x32xf32> to vector<16x4x8xf32>
    %50 = tpu.transpose %49, [1, 0, 2] : vector<16x4x8xf32> -> vector<4x16x8xf32>
    "tpu.trace_start"() <{level = 10 : i32, message = "hnd,hsd->hns"}> : () -> ()
    %cst_20 = arith.constant dense<0.000000e+00> : vector<4x16x16xf32>
    %51 = tpu.matmul %46, %48, %cst_20 {dimension_numbers = #tpu.dot_dimension_numbers<[2], [2], [1], [1], [0, 0, 0, 1, 1, 1], [0], [0]>} : vector<4x16x8xf32>, vector<4x16x8xf32>, vector<4x16x16xf32> -> vector<4x16x16xf32>
    "tpu.trace_stop"() : () -> ()
    %c0_21 = arith.constant 0 : index
    %c0_22 = arith.constant 0 : index
    %c0_23 = arith.constant 0 : index
    %52 = vector.load %arg4[%c0_21, %c0_22, %c0_23] : memref<4x16x16xf32, #tpu.memory_space<vmem>>, vector<4x16x16xf32>
    %53 = arith.mulf %51, %52 : vector<4x16x16xf32>
    "tpu.trace_start"() <{level = 10 : i32, message = "hns,hsd->hnd"}> : () -> ()
    %cst_24 = arith.constant dense<0.000000e+00> : vector<4x16x8xf32>
    %54 = tpu.matmul %53, %50, %cst_24 {dimension_numbers = #tpu.dot_dimension_numbers<[2], [1], [1], [2], [0, 0, 0, 1, 1, 2], [0], [0]>} : vector<4x16x16xf32>, vector<4x16x8xf32>, vector<4x16x8xf32> -> vector<4x16x8xf32>
    "tpu.trace_stop"() : () -> ()
    %cst_25 = arith.constant dense<0.000000e+00> : vector<4x16xf32>
    %55 = vector.multi_reduction <add>, %54, %cst_25 [2] : vector<4x16x8xf32> to vector<4x16xf32>
    %56 = vector.shape_cast %55 : vector<4x16xf32> to vector<4x16x1xf32>
    %cst_26 = arith.constant 8.000000e+00 : f32
    %57 = vector.broadcast %cst_26 : f32 to vector<4x16x1xf32>
    %58 = arith.divf %56, %57 : vector<4x16x1xf32>
    %59 = vector.broadcast %58 : vector<4x16x1xf32> to vector<4x16x8xf32>
    %60 = arith.subf %54, %59 : vector<4x16x8xf32>
    %61 = arith.mulf %60, %60 : vector<4x16x8xf32>
    %cst_27 = arith.constant dense<0.000000e+00> : vector<4x16xf32>
    %62 = vector.multi_reduction <add>, %61, %cst_27 [2] : vector<4x16x8xf32> to vector<4x16xf32>
    %63 = vector.shape_cast %62 : vector<4x16xf32> to vector<4x16x1xf32>
    %cst_28 = arith.constant 8.000000e+00 : f32
    %64 = vector.broadcast %cst_28 : f32 to vector<4x16x1xf32>
    %65 = arith.divf %63, %64 : vector<4x16x1xf32>
    %66 = vector.broadcast %58 : vector<4x16x1xf32> to vector<4x16x8xf32>
    %67 = arith.subf %54, %66 : vector<4x16x8xf32>
    %cst_29 = arith.constant 9.99999997E-7 : f32
    %68 = vector.broadcast %cst_29 : f32 to vector<4x16x1xf32>
    %69 = arith.addf %65, %68 : vector<4x16x1xf32>
    %70 = math.rsqrt %69 : vector<4x16x1xf32>
    %71 = vector.broadcast %70 : vector<4x16x1xf32> to vector<4x16x8xf32>
    %72 = arith.mulf %67, %71 : vector<4x16x8xf32>
    %73 = tpu.transpose %72, [1, 0, 2] : vector<4x16x8xf32> -> vector<16x4x8xf32>
    %74 = vector.shape_cast %73 : vector<16x4x8xf32> to vector<16x32xf32>
    %75 = arith.negf %44 : vector<16x32xf32>
    %76 = math.exp %75 : vector<16x32xf32>
    %cst_30 = arith.constant 1.000000e+00 : f32
    %77 = vector.broadcast %cst_30 : f32 to vector<16x32xf32>
    %78 = arith.addf %77, %76 : vector<16x32xf32>
    %79 = arith.divf %77, %78 : vector<16x32xf32>
    %80 = arith.mulf %44, %79 : vector<16x32xf32>
    %81 = arith.mulf %74, %80 : vector<16x32xf32>
    %cst_31 = arith.constant dense<0.000000e+00> : vector<16x32xf32>
    %82 = tpu.matmul %81, %3, %cst_31 {dimension_numbers = #tpu.dot_dimension_numbers<[1], [0], [0], [1], [0, 0, 1, 1], [], []>} : vector<16x32xf32>, vector<32x32xf32>, vector<16x32xf32> -> vector<16x32xf32>
    %83 = vector.broadcast %7 : vector<1x32xf32> to vector<16x32xf32>
    %84 = arith.addf %82, %83 : vector<16x32xf32>
    %85 = arith.addf %1, %84 : vector<16x32xf32>
    %cst_32 = arith.constant dense<0.000000e+00> : vector<16xf32>
    %86 = vector.multi_reduction <add>, %85, %cst_32 [1] : vector<16x32xf32> to vector<16xf32>
    %87 = vector.shape_cast %86 : vector<16xf32> to vector<16x1xf32>
    %cst_33 = arith.constant 3.200000e+01 : f32
    %88 = vector.broadcast %cst_33 : f32 to vector<16x1xf32>
    %89 = arith.divf %87, %88 : vector<16x1xf32>
    %90 = vector.broadcast %89 : vector<16x1xf32> to vector<16x32xf32>
    %91 = arith.subf %85, %90 : vector<16x32xf32>
    %92 = arith.mulf %91, %91 : vector<16x32xf32>
    %cst_34 = arith.constant dense<0.000000e+00> : vector<16xf32>
    %93 = vector.multi_reduction <add>, %92, %cst_34 [1] : vector<16x32xf32> to vector<16xf32>
    %94 = vector.shape_cast %93 : vector<16xf32> to vector<16x1xf32>
    %cst_35 = arith.constant 3.200000e+01 : f32
    %95 = vector.broadcast %cst_35 : f32 to vector<16x1xf32>
    %96 = arith.divf %94, %95 : vector<16x1xf32>
    %97 = vector.broadcast %89 : vector<16x1xf32> to vector<16x32xf32>
    %98 = arith.subf %85, %97 : vector<16x32xf32>
    %cst_36 = arith.constant 9.99999997E-7 : f32
    %99 = vector.broadcast %cst_36 : f32 to vector<16x1xf32>
    %100 = arith.addf %96, %99 : vector<16x1xf32>
    %101 = math.rsqrt %100 : vector<16x1xf32>
    %102 = vector.broadcast %101 : vector<16x1xf32> to vector<16x32xf32>
    %103 = arith.mulf %98, %102 : vector<16x32xf32>
    %cst_37 = arith.constant dense<0.000000e+00> : vector<16x64xf32>
    %104 = tpu.matmul %103, %4, %cst_37 {dimension_numbers = #tpu.dot_dimension_numbers<[1], [0], [0], [1], [0, 0, 1, 1], [], []>} : vector<16x32xf32>, vector<32x64xf32>, vector<16x64xf32> -> vector<16x64xf32>
    %105 = vector.broadcast %8 : vector<1x64xf32> to vector<16x64xf32>
    %106 = arith.addf %104, %105 : vector<16x64xf32>
    %107 = arith.negf %106 : vector<16x64xf32>
    %108 = math.exp %107 : vector<16x64xf32>
    %cst_38 = arith.constant 1.000000e+00 : f32
    %109 = vector.broadcast %cst_38 : f32 to vector<16x64xf32>
    %110 = arith.addf %109, %108 : vector<16x64xf32>
    %111 = arith.divf %109, %110 : vector<16x64xf32>
    %112 = arith.mulf %106, %111 : vector<16x64xf32>
    %cst_39 = arith.constant dense<0.000000e+00> : vector<16x32xf32>
    %113 = tpu.matmul %112, %5, %cst_39 {dimension_numbers = #tpu.dot_dimension_numbers<[1], [0], [0], [1], [0, 0, 1, 1], [], []>} : vector<16x64xf32>, vector<64x32xf32>, vector<16x32xf32> -> vector<16x32xf32>
    %114 = vector.broadcast %9 : vector<1x32xf32> to vector<16x32xf32>
    %115 = arith.addf %113, %114 : vector<16x32xf32>
    %116 = arith.addf %85, %115 : vector<16x32xf32>
    %117 = vector.shape_cast %116 : vector<16x32xf32> to vector<2x8x32xf32>
    %c0_40 = arith.constant 0 : index
    %c0_41 = arith.constant 0 : index
    %c0_42 = arith.constant 0 : index
    %118 = vector.load %arg5[%c0_40, %c0_41, %c0_42] : memref<2x8x32xf32, #tpu.memory_space<vmem>>, vector<2x8x32xf32>
    tpu.vector_store %arg5[%c0_40, %c0_41, %c0_42], %117 {strides = array<i32>} : memref<2x8x32xf32, #tpu.memory_space<vmem>>, vector<2x8x32xf32>,
    return
  }
  func.func @transform_0(%arg0: i32) -> (i32, i32, i32) {
    %c0_i32 = arith.constant 0 : i32
    %c0_i32_0 = arith.constant 0 : i32
    %c0_i32_1 = arith.constant 0 : i32
    %c0_i32_2 = arith.constant 0 : i32
    return %c0_i32, %c0_i32_0, %c0_i32_1 : i32, i32, i32
  }
  func.func @transform_1(%arg0: i32) -> (i32, i32) {
    %c0_i32 = arith.constant 0 : i32
    %c0_i32_0 = arith.constant 0 : i32
    %c0_i32_1 = arith.constant 0 : i32
    return %c0_i32, %c0_i32_0 : i32, i32
  }
  func.func @transform_2(%arg0: i32) -> (i32, i32) {
    %c0_i32 = arith.constant 0 : i32
    %c0_i32_0 = arith.constant 0 : i32
    %c0_i32_1 = arith.constant 0 : i32
    return %c0_i32, %c0_i32_0 : i32, i32
  }
  func.func @transform_3(%arg0: i32) -> (i32, i32, i32) {
    %c0_i32 = arith.constant 0 : i32
    %c0_i32_0 = arith.constant 0 : i32
    %c0_i32_1 = arith.constant 0 : i32
    %c0_i32_2 = arith.constant 0 : i32
    return %c0_i32, %c0_i32_0, %c0_i32_1 : i32, i32, i32
  }
  func.func @transform_4(%arg0: i32) -> (i32, i32, i32) {
    %c0_i32 = arith.constant 0 : i32
    %c0_i32_0 = arith.constant 0 : i32
    %c0_i32_1 = arith.constant 0 : i32
    %c0_i32_2 = arith.constant 0 : i32
    return %c0_i32, %c0_i32_0, %c0_i32_1 : i32, i32, i32
  }
}

</mosaic_0001>

<bundles_post_ra>
// kernel: tpu_custom_call.1
= control target key start
LH: loop header
LB: loop body
LE: loop exit
PB: predicated region body
PF: predicated region fallthrough
CT: control target
= control target key end

     0   :  { %9 = vsyncpa [#allocation3], 0  ;;  %s3563_s0 = inlined_call_operand.hbm [shape: f32[2,8,32], index: 0, kind: input, shape index: {}]   ;;  %s3564_s1 = inlined_call_operand.hbm [shape: f32[160,128], index: 1, kind: input, shape index: {}]   ;;  %s3565_s2 = inlined_call_operand.hbm [shape: f32[56,128], index: 2, kind: input, shape index: {}]   ;;  %s3566_s3 = inlined_call_operand.hbm [shape: f32[4,16,16], index: 3, kind: input, shape index: {}]   ;;  %s3567_s4 = inlined_call_operand.hbm [shape: f32[2,8,32], index: 4, kind: output, shape index: {}]  }
   0x1   :  { %10 = vsyncpa [#allocation6], 0 }
   0x2   :  { %11 = vsyncpa [#allocation9], 0 }
   0x3   :  { %12 = vsyncpa [#allocation4], 0  ;;  %s3046_s15 = smov [#allocation5]   ;;  %s3047_s17 = smov [#allocation2]  }
   0x4   :  { %s30_s16 = sshll.u32 %s3046_s15, 4  ;;  %s18_s18 = sshll.u32 %s3047_s17, 4  ;;  %s31_s16 = int_to_ptr.vmem [resolvable:$true] %s30_s16  ;;  %s3090_s18 = int_to_ptr.vmem [resolvable:$true] %s18_s18 }
   0x5   :  { %s2928_s21 = scalar_lea.hbm %s3564_s1, 2560 }
   0x6   :  { %p2929_p0 = scmp.ne.s32.totalorder %s3564_s1, %s2928_s21  ;;  %p2932_p1 = scmp.lt.u32.totalorder %s2928_s21, %s3564_s1 }
   0x8   :  { %p2934_p2 = pnand %p2932_p1, %p2929_p0 }
   0xa   :  { %2937 = shalt.err (!%p2934_p2)
}
   0xb   :  { %s2938_s26 = scalar_lea.vmem %s31_s16, 2560  ;;  %p2943_p4 = scmp.lt.s32.totalorder %s31_s16, %s31_s16 }
   0xc   :  { %p2939_p3 = scmp.ne.s32.totalorder %s31_s16, %s2938_s26  ;;  %p2944_p5 = scmp.lt.s32.totalorder %s2938_s26, %s2938_s26 }
   0xe   :  { %p2945_p6 = por %p2944_p5, %p2943_p4 }
  0x10   :  { %p2946_p7 = pnand %p2945_p6, %p2939_p3 }
  0x12   :  { %2949 = shalt.err (!%p2946_p7)
}
  0x13   :  { %s3048_s27 = smov 128   ;;  %s3049_s28 = smov 8  }
  0x14   :  { %36 = dma.hbm_to_vmem [thread:$0]  %s3564_s1, 2560, %s31_s16, [#allocation6], %s3048_s27, %s3048_s27, %s3049_s28  }
  0x15   :  { %s2950_s7 = scalar_lea.hbm %s3563_s0, 256 }
  0x16   :  { %p2951_p8 = scmp.ne.s32.totalorder %s3563_s0, %s2950_s7  ;;  %p2954_p9 = scmp.lt.u32.totalorder %s2950_s7, %s3563_s0 }
  0x18   :  { %p2956_p10 = pnand %p2954_p9, %p2951_p8 }
  0x1a   :  { %2959 = shalt.err (!%p2956_p10)
}
  0x1b   :  { %s2960_s12 = scalar_lea.vmem %s3090_s18, 256  ;;  %p2965_p12 = scmp.lt.s32.totalorder %s3090_s18, %s3090_s18 }
  0x1c   :  { %p2961_p11 = scmp.ne.s32.totalorder %s3090_s18, %s2960_s12  ;;  %p2966_p13 = scmp.lt.s32.totalorder %s2960_s12, %s2960_s12 }
  0x1e   :  { %p2967_p0 = por %p2966_p13, %p2965_p12 }
  0x20   :  { %p2968_p1 = pnand %p2967_p0, %p2961_p11 }
  0x22   :  { %2971 = shalt.err (!%p2968_p1)
}
  0x23   :  { %24 = dma.hbm_to_vmem [thread:$0]  %s3563_s0, 256, %s3090_s18, [#allocation3], %s3048_s27, %s3048_s27, %s3049_s28  }
  0x24   :  { %s3050_s14 = smov [#allocation7]   ;;  %s3051_s16 = smov [#allocation8]  }
  0x25   :  { %s42_s15 = sshll.u32 %s3050_s14, 4  ;;  %s54_s17 = sshll.u32 %s3051_s16, 4  ;;  %s43_s15 = int_to_ptr.vmem [resolvable:$true] %s42_s15  ;;  %s3127_s17 = int_to_ptr.vmem [resolvable:$true] %s54_s17 }
  0x26   :  { %s2972_s21 = scalar_lea.hbm %s3565_s2, 896 }
  0x27   :  { %p2973_p2 = scmp.ne.s32.totalorder %s3565_s2, %s2972_s21  ;;  %p2976_p3 = scmp.lt.u32.totalorder %s2972_s21, %s3565_s2 }
  0x29   :  { %p2978_p4 = pnand %p2976_p3, %p2973_p2 }
  0x2b   :  { %2981 = shalt.err (!%p2978_p4)
}
  0x2c   :  { %s2982_s0 = scalar_lea.vmem %s43_s15, 896  ;;  %p2987_p6 = scmp.lt.s32.totalorder %s43_s15, %s43_s15 }
  0x2d   :  { %p2983_p5 = scmp.ne.s32.totalorder %s43_s15, %s2982_s0  ;;  %p2988_p7 = scmp.lt.s32.totalorder %s2982_s0, %s2982_s0 }
  0x2f   :  { %p2989_p8 = por %p2988_p7, %p2987_p6 }
  0x31   :  { %p2990_p9 = pnand %p2989_p8, %p2983_p5 }
  0x33   :  { %2993 = shalt.err (!%p2990_p9)
}
  0x34   :  { %48 = dma.hbm_to_vmem [thread:$0]  %s3565_s2, 896, %s43_s15, [#allocation6], %s3048_s27, %s3048_s27, %s3049_s28  }
  0x35   :  { %s2994_s5 = scalar_lea.hbm %s3566_s3, 1024 }
  0x36   :  { %p2995_p10 = scmp.ne.s32.totalorder %s3566_s3, %s2994_s5  ;;  %p2998_p11 = scmp.lt.u32.totalorder %s2994_s5, %s3566_s3 }
  0x38   :  { %p3000_p12 = pnand %p2998_p11, %p2995_p10 }
  0x3a   :  { %3003 = shalt.err (!%p3000_p12)
}
  0x3b   :  { %s3004_s10 = scalar_lea.vmem %s3127_s17, 1024  ;;  %p3009_p0 = scmp.lt.s32.totalorder %s3127_s17, %s3127_s17 }
  0x3c   :  { %p3005_p13 = scmp.ne.s32.totalorder %s3127_s17, %s3004_s10  ;;  %p3010_p1 = scmp.lt.s32.totalorder %s3004_s10, %s3004_s10 }
  0x3e   :  { %p3011_p2 = por %p3010_p1, %p3009_p0 }
  0x40   :  { %p3012_p3 = pnand %p3011_p2, %p3005_p13 }
  0x42   :  { %3015 = shalt.err (!%p3012_p3)
}
  0x43   :  { %60 = dma.hbm_to_vmem [thread:$0]  %s3566_s3, 1024, %s3127_s17, [#allocation9], %s3048_s27, %s3048_s27, %s3049_s28  }
  0x44   :  { %3038 = dma.done.wait [#allocation3], 256  }
  0x45   :  { %3039 = vsyncadd [#allocation3], 4294967040 }
  0x46   :  { %3040 = dma.done.wait [#allocation6], 3456  }
  0x47   :  { %3041 = vsyncadd [#allocation6], 4294963840 }
  0x48   :  { %3042 = dma.done.wait [#allocation9], 1024  }
  0x49   :  { %3043 = vsyncadd [#allocation9], 4294966272  ;;  %vm105_vm0 = vcmask 261120   ;;  %v73_v0 = vld [vmem:[#allocation2] sm:$0xff]  ;;  %v74_v1 = vld [vmem:[#allocation2 + $0x8] sm:$0xff]  ;;  %s3052_s3 = smov 127   ;;  %v261_v57 = vlaneseq }
  0x4a   :  { %v106_v2 = vsel %vm105_vm0, %v73_v0, 0.0  ;;  %v109_v3 = vsel %vm105_vm0, %v74_v1, 0.0  ;;  %v75_v14 = vld [vmem:[#allocation5] sm:$0xff]  ;;  %v76_v15 = vld [vmem:[#allocation5 + $0x8] sm:$0xff]  ;;  %v77_v16 = vld [vmem:[#allocation5 + $0x10] sm:$0xff]  ;;  %s3053_s12 = smov 1  }
  0x4b   :  { %107 = vadd.xlane.f32.xlu0 %v106_v2  ;;  %v2787_v17 = vpack.c.bf16 %v76_v15, %v75_v14  ;;  %v78_v18 = vld [vmem:[#allocation5 + $0x18] sm:$0xff]  ;;  %v2563_v30 = vld [vmem:[#allocation7] ss:$0 sm:$0xff]  ;;  %v99_v35 = vld [vmem:[#allocation7 + $0x8] sm:$0xff]  ;;  %s3054_s1 = smov 120   ;;  %s3055_s13 = smov 112  }
  0x4c   :  { %v2791_v19 = vpack.c.bf16 %v78_v18, %v77_v16  ;;  %v101_v36 = vld [vmem:[#allocation7 + $0x18] sm:$0xff]  ;;  %v102_v39 = vld [vmem:[#allocation7 + $0x20] sm:$0xff]  ;;  %v103_v42 = vld [vmem:[#allocation7 + $0x28] sm:$0xff]  ;;  %s3056_s14 = smov 104   ;;  %s3057_s15 = smov 96   ;;  %v262_v62 = vshrl.u32 %v261_v57, 7 }
  0x4d   :  { %2788 = vmatprep.subr.bf16.mxu1 %v2787_v17  ;;  %v100_v43 = vld [vmem:[#allocation7 + $0x10] sm:$0xff]  ;;  %v3058_v55 = vmov 1983009808   ;;  %v3059_v59 = vmov 1934713408   ;;  %s3060_s16 = smov 64  }
  0x4e   :  { %2790 = vmatpush3.bf16.msra.mxu1 %v2787_v17  ;;  %v104_v48 = vld [vmem:[#allocation7 + $0x30] sm:$0xff]  ;;  %v259_v56 = vunpack.c.l.s4 %v3058_v55  ;;  %v291_v60 = vunpack.c.l.s4 %v3059_v59  ;;  %vm1120_vm1 = vcmask 64512   ;;  %vm1485_vm3 = vcmask 130048   ;;  %s3061_s17 = smov 24   ;;  %s3062_s19 = smov 32  }
  0x4f   :  { %110 = vadd.xlane.f32.xlu0 %v109_v3  ;;  %2792 = vmatprep.subr.bf16.mxu1 %v2791_v19  ;;  %vm3354_vm2 = vmpackc.low %vm1120_vm1, %vm1120_vm1  ;;  %s3063_s20 = smov 16   ;;  %vm2215_vm4 = vcmask 195584   ;;  %vm2458_vm5 = vcmask 523264   ;;  %s3064_s21 = smov [#allocation10]  }
  0x50   :  { %v260_v61 = vunpack.c.0.s8 %v259_v56  ;;  %s2549_s22 = sshll.u32 %s3064_s21, 4  ;;  %s2550_s22 = int_to_ptr.vmem [resolvable:$true] %s2549_s22 }
  0x51   :  { %s3016_s23 = scalar_lea.vmem %s2550_s22, 256  ;;  %p3021_p5 = scmp.lt.s32.totalorder %s2550_s22, %s2550_s22 }
  0x52   :  { %2794 = vmatpush3.bf16.msra.mxu1 %v2791_v19  ;;  %v3190_v2 = vsub.s32 %v260_v61, %v262_v62  ;;  %p3017_p4 = scmp.ne.s32.totalorder %s2550_s22, %s3016_s23  ;;  %p3022_p6 = scmp.lt.s32.totalorder %s3016_s23, %s3016_s23 }
  0x54   :  { %p3023_p7 = por %p3022_p6, %p3021_p5 }
  0x56   :  { %p3024_p8 = pnand %p3023_p7, %p3017_p4 }
  0xd8   :  { %v108_v4 = vpop.xlane.xlu0 %107 }
  0xd9   :  { %v113_v5 = vmul.f32 0.03125, %v108_v4 }
  0xdb   :  { %v115_v6 = vsub.f32 %v73_v0, %v113_v5 }
  0xdc   :  { %v111_v7 = vpop.xlane.xlu0 %110 }
  0xdd   :  { %v114_v8 = vmul.f32 0.03125, %v111_v7  ;;  %v117_v9 = vmul.f32 %v115_v6, %v115_v6 }
  0xdf   :  { %v116_v10 = vsub.f32 %v74_v1, %v114_v8  ;;  %v119_v11 = vsel %vm105_vm0, %v117_v9, 0.0  ;;  %v292_v1 = vunpack.c.0.s8 %v291_v60 }
  0xe0   :  { %120 = vadd.xlane.f32.xlu1 %v119_v11 }
  0xe1   :  { %v118_v12 = vmul.f32 %v116_v10, %v116_v10  ;;  %v3204_v9 = vsub.s32 %v292_v1, %v262_v62 }
  0xe3   :  { %v122_v13 = vsel %vm105_vm0, %v118_v12, 0.0 }
  0xe4   :  { %123 = vadd.xlane.f32.xlu1 %v122_v13 }
 0x16d   :  { %v121_v20 = vpop.xlane.xlu1 %120 }
 0x16e   :  { %v125_v21 = vmul.f32 0.03125, %v121_v20 }
 0x170   :  { %v127_v22 = vadd.f32 1e-06, %v125_v21 }
 0x171   :  { %v124_v23 = vpop.xlane.xlu1 %123 }
 0x172   :  { %2886 = vrsqrt.f32 %v127_v22  ;;  %v126_v24 = vmul.f32 0.03125, %v124_v23 }
 0x174   :  { %v128_v25 = vadd.f32 1e-06, %v126_v24 }
 0x176   :  { %2888 = vrsqrt.f32 %v128_v25 }
 0x17c   :  { %v2887_v26 = vpop.eup %2886 }
 0x17d   :  { %v131_v27 = vmul.f32 %v2887_v26, %v115_v6 }
 0x17f   :  { %2687 = vmatprep.mubr.msk.f32.mxu1 %vm105_vm0, %v131_v27 }
 0x180   :  { %v2889_v28 = vpop.eup %2888 }
 0x181   :  { %v132_v29 = vmul.f32 %v2889_v28, %v116_v10 }
 0x183   :  { %2688 = vmatmul.mubr.msk.f32.vlgmr.msra.gmra.mrb[0].mxu1 %vm105_vm0, %v132_v29 }
 0x256   :  { %v2689_v31 = vpop.f32.mrb[0].mxu1 }
 0x257   :  { %v215_v32 = vadd.f32 %v2689_v31, %v2563_v30  ;;  %v209_v33 = vpop.f32.mrb[1].mxu1 }
 0x258   :  { %v210_v34 = vadd.f32 %v2563_v30, %v209_v33 }
 0x259   :  { %220 = vrot.lane.b32.xlu1 %v215_v32, %s3052_s3  ;;  %v227_v49 = vmul.f32 %v215_v32, %v100_v43 }
 0x25a   :  { %218 = vrot.lane.b32.xlu0 %v210_v34, %s3052_s3  ;;  %v226_v40 = vmul.f32 %v210_v34, %v99_v35 }
 0x25d   :  { %222 = vrot.lane.b32.xlu1 %v210_v34, %s3053_s12 }
 0x261   :  { %224 = vrot.lane.b32.xlu1 %v215_v32, %s3053_s12 }
 0x2cb   :  { %v221_v37 = vpop.permute.xlu1 %220 }
 0x2cc   :  { %v219_v38 = vpop.permute.xlu0 %218  ;;  %v229_v46 = vmul.f32 %v221_v37, %v102_v39 }
 0x2cd   :  { %v228_v41 = vmul.f32 %v219_v38, %v101_v36 }
 0x2ce   :  { %v231_v52 = vadd.f32 %v229_v46, %v227_v49 }
 0x2cf   :  { %v230_v44 = vadd.f32 %v228_v41, %v226_v40  ;;  %v223_v45 = vpop.permute.xlu1 %222 }
 0x2d0   :  { %v232_v47 = vmul.f32 %v223_v45, %v103_v42 }
 0x2d2   :  { %v3170_v50 = vadd.f32 %v232_v47, %v230_v44 }
 0x2d3   :  { %v225_v51 = vpop.permute.xlu1 %224 }
 0x2d4   :  { %v233_v53 = vmul.f32 %v225_v51, %v104_v48  ;;  %238 = vrot.lane.b32.xlu0 %v3170_v50, %s3054_s1 }
 0x2d6   :  { %v3173_v54 = vadd.f32 %v233_v53, %v231_v52 }
 0x2d8   :  { %240 = vrot.lane.b32.xlu1 %v3173_v54, %s3054_s1  ;;  %244 = vrot.lane.b32.xlu0 %v3170_v50, %s3055_s13 }
 0x2dc   :  { %246 = vrot.lane.b32.xlu1 %v3173_v54, %s3055_s13  ;;  %250 = vrot.lane.b32.xlu0 %v3170_v50, %s3056_s14 }
 0x2e0   :  { %252 = vrot.lane.b32.xlu1 %v3173_v54, %s3056_s14  ;;  %528 = vrot.lane.b32.xlu0 %v3170_v50, %s3057_s15 }
 0x2e4   :  { %530 = vrot.lane.b32.xlu1 %v3173_v54, %s3057_s15 }
 0x346   :  { %v239_v58 = vpop.permute.xlu0 %238 }
 0x347   :  { %532 = vrot.lane.b32.xlu0 %v239_v58, %s3057_s15 }
 0x34a   :  { %v241_v63 = vpop.permute.xlu1 %240  ;;  %v3185_v0 = vpop.permute.xlu0 %244 }
 0x34b   :  { %534 = vrot.lane.b32.xlu1 %v241_v63, %s3057_s15  ;;  %536 = vrot.lane.b32.xlu0 %v3185_v0, %s3057_s15  ;;  %v256_v3 = vcombine.low %v3170_v50, %v3185_v0  ;;  %v257_v4 = vcombine.high %v3170_v50, %v3185_v0 }
 0x34d   :  { %v264_v10 = vrot.slane %v256_v3, %v3190_v2  ;;  %v271_v11 = vrot.slane %v257_v4, %v3190_v2 }
 0x34e   :  { %v3196_v5 = vpop.permute.xlu1 %246  ;;  %v3198_v6 = vpop.permute.xlu0 %250 }
 0x34f   :  { %v272_v7 = vcombine.low %v239_v58, %v3198_v6  ;;  %v273_v8 = vcombine.high %v239_v58, %v3198_v6  ;;  %538 = vrot.lane.b32.xlu1 %v3196_v5, %s3057_s15  ;;  %540 = vrot.lane.b32.xlu0 %v3198_v6, %s3057_s15  ;;  %v324_v14 = vcombine.low %v3173_v54, %v3196_v5 }
 0x350   :  { %v325_v15 = vcombine.high %v3173_v54, %v3196_v5 }
 0x351   :  { %v280_v12 = vrot.slane %v272_v7, %v3190_v2  ;;  %v287_v13 = vrot.slane %v273_v8, %v3190_v2  ;;  %v332_v27 = vrot.slane %v324_v14, %v3190_v2 }
 0x352   :  { %v3216_v16 = vpop.permute.xlu1 %252  ;;  %v339_v28 = vrot.slane %v325_v15, %v3190_v2 }
 0x353   :  { %v288_v17 = vcombine.low %v264_v10, %v280_v12  ;;  %v289_v18 = vcombine.high %v264_v10, %v280_v12  ;;  %v304_v19 = vcombine.low %v271_v11, %v287_v13  ;;  %v305_v20 = vcombine.high %v271_v11, %v287_v13  ;;  %542 = vrot.lane.b32.xlu1 %v3216_v16, %s3057_s15 }
 0x354   :  { %v340_v21 = vcombine.low %v241_v63, %v3216_v16  ;;  %v341_v22 = vcombine.high %v241_v63, %v3216_v16  ;;  %824 = vrot.lane.b32.xlu0 %v3170_v50, %s3060_s16 }
 0x355   :  { %v296_v23 = vrot.slane %v288_v17, %v3204_v9  ;;  %v303_v24 = vrot.slane %v289_v18, %v3204_v9  ;;  %v312_v25 = vrot.slane %v304_v19, %v3204_v9  ;;  %v319_v26 = vrot.slane %v305_v20, %v3204_v9  ;;  %v529_v20 = vpop.permute.xlu0 %528 }
 0x356   :  { %v348_v29 = vrot.slane %v340_v21, %v3190_v2  ;;  %v355_v30 = vrot.slane %v341_v22, %v3190_v2  ;;  %v531_v21 = vpop.permute.xlu1 %530 }
 0x357   :  { %v392_v31 = vcombine.low %v296_v23, %v303_v24  ;;  %v2566_v32 = vcombine.high %v296_v23, %v303_v24  ;;  %v408_v33 = vcombine.low %v312_v25, %v319_v26  ;;  %v2567_v34 = vcombine.high %v312_v25, %v319_v26  ;;  %826 = vrot.lane.b32.xlu1 %v3173_v54, %s3060_s16 }
 0x358   :  { %v356_v35 = vcombine.low %v332_v27, %v348_v29  ;;  %v357_v36 = vcombine.high %v332_v27, %v348_v29  ;;  %v372_v37 = vcombine.low %v339_v28, %v355_v30  ;;  %v373_v38 = vcombine.high %v339_v28, %v355_v30  ;;  %828 = vrot.lane.b32.xlu0 %v239_v58, %s3060_s16 }
 0x359   :  { %v399_v39 = vrot.slane %v392_v31, %v3190_v2  ;;  %v407_v40 = vrot.slane %v2566_v32, %v3190_v2  ;;  %v415_v41 = vrot.slane %v408_v33, %v3190_v2  ;;  %v423_v42 = vrot.slane %v2567_v34, %v3190_v2 }
 0x35a   :  { %v364_v43 = vrot.slane %v356_v35, %v3204_v9  ;;  %v371_v44 = vrot.slane %v357_v36, %v3204_v9  ;;  %v380_v45 = vrot.slane %v372_v37, %v3204_v9  ;;  %v387_v46 = vrot.slane %v373_v38, %v3204_v9 }
 0x35b   :  { %830 = vrot.lane.b32.xlu1 %v241_v63, %s3060_s16  ;;  %v424_v47 = vcombine.low %v399_v39, %v407_v40  ;;  %v440_v48 = vcombine.low %v415_v41, %v423_v42  ;;  %v425_v49 = vcombine.high %v399_v39, %v407_v40  ;;  %v441_v51 = vcombine.high %v415_v41, %v423_v42 }
 0x35c   :  { %v460_v52 = vcombine.low %v364_v43, %v371_v44  ;;  %v2568_v53 = vcombine.high %v364_v43, %v371_v44  ;;  %v476_v55 = vcombine.low %v380_v45, %v387_v46  ;;  %v2569_v56 = vcombine.high %v380_v45, %v387_v46  ;;  %832 = vrot.lane.b32.xlu0 %v3185_v0, %s3060_s16 }
 0x35d   :  { %v432_v57 = vrot.slane %v424_v47, %v3204_v9  ;;  %v448_v58 = vrot.slane %v440_v48, %v3204_v9  ;;  %v3249_v59 = vrot.slane %v425_v49, %v3204_v9  ;;  %v3252_v60 = vrot.slane %v441_v51, %v3204_v9 }
 0x35e   :  { %v467_v61 = vrot.slane %v460_v52, %v3190_v2  ;;  %v475_v62 = vrot.slane %v2568_v53, %v3190_v2  ;;  %v483_v63 = vrot.slane %v476_v55, %v3190_v2  ;;  %v491_v1 = vrot.slane %v2569_v56, %v3190_v2 }
 0x35f   :  { %834 = vrot.lane.b32.xlu1 %v3196_v5, %s3060_s16  ;;  %v456_v0 = vcombine.low %v432_v57, %v448_v58  ;;  %v457_v3 = vcombine.high %v432_v57, %v448_v58  ;;  %v458_v4 = vcombine.low %v3249_v59, %v3252_v60  ;;  %v459_v7 = vcombine.high %v3249_v59, %v3252_v60 }
 0x360   :  { %836 = vrot.lane.b32.xlu0 %v3198_v6, %s3060_s16  ;;  %v492_v8 = vcombine.low %v467_v61, %v475_v62  ;;  %v508_v10 = vcombine.low %v483_v63, %v491_v1  ;;  %v493_v11 = vcombine.high %v467_v61, %v475_v62  ;;  %v509_v12 = vcombine.high %v483_v63, %v491_v1 }
 0x361   :  { %2694 = vmatprep.mubr.msk.f32.mxu1 %vm1120_vm1, %v456_v0  ;;  %2701 = vmatprep.mubr.msk.f32.mxu0 %vm1120_vm1, %v457_v3 }
 0x362   :  { %v3269_v5 = vrot.slane %v492_v8, %v3204_v9  ;;  %v3272_v13 = vrot.slane %v508_v10, %v3204_v9  ;;  %v3275_v14 = vrot.slane %v493_v11, %v3204_v9  ;;  %v3278_v15 = vrot.slane %v509_v12, %v3204_v9 }
 0x363   :  { %838 = vrot.lane.b32.xlu1 %v3216_v16, %s3060_s16 }
 0x364   :  { %v524_v6 = vcombine.low %v3269_v5, %v3272_v13  ;;  %v525_v17 = vcombine.high %v3269_v5, %v3272_v13  ;;  %v526_v18 = vcombine.low %v3275_v14, %v3278_v15  ;;  %v527_v19 = vcombine.high %v3275_v14, %v3278_v15  ;;  %v1473_v15 = vld [vmem:[#allocation8 + $0x20] sm:$0xff] }
 0x3b9   :  { %v533_v22 = vpop.permute.xlu0 %532 }
 0x3bd   :  { %v535_v23 = vpop.permute.xlu1 %534  ;;  %v537_v24 = vpop.permute.xlu0 %536 }
 0x3be   :  { %v552_v25 = vcombine.low %v529_v20, %v537_v24  ;;  %v553_v26 = vcombine.high %v529_v20, %v537_v24 }
 0x3c0   :  { %v560_v32 = vrot.slane %v552_v25, %v3190_v2  ;;  %v567_v33 = vrot.slane %v553_v26, %v3190_v2 }
 0x3c1   :  { %v539_v16 = vpop.permute.xlu1 %538  ;;  %v541_v27 = vpop.permute.xlu0 %540 }
 0x3c2   :  { %v568_v28 = vcombine.low %v533_v22, %v541_v27  ;;  %v569_v29 = vcombine.high %v533_v22, %v541_v27  ;;  %v620_v30 = vcombine.low %v531_v21, %v539_v16  ;;  %v621_v31 = vcombine.high %v531_v21, %v539_v16 }
 0x3c4   :  { %v576_v34 = vrot.slane %v568_v28, %v3190_v2  ;;  %v583_v35 = vrot.slane %v569_v29, %v3190_v2  ;;  %v628_v44 = vrot.slane %v620_v30, %v3190_v2  ;;  %v635_v45 = vrot.slane %v621_v31, %v3190_v2 }
 0x3c5   :  { %v543_v36 = vpop.permute.xlu1 %542 }
 0x3c6   :  { %v636_v37 = vcombine.low %v535_v23, %v543_v36  ;;  %v637_v38 = vcombine.high %v535_v23, %v543_v36  ;;  %v825_v39 = vpop.permute.xlu0 %824  ;;  %v584_v40 = vcombine.low %v560_v32, %v576_v34  ;;  %v585_v41 = vcombine.high %v560_v32, %v576_v34 }
 0x3c7   :  { %v600_v42 = vcombine.low %v567_v33, %v583_v35  ;;  %v601_v43 = vcombine.high %v567_v33, %v583_v35 }
 0x3c8   :  { %v644_v46 = vrot.slane %v636_v37, %v3190_v2  ;;  %v651_v47 = vrot.slane %v637_v38, %v3190_v2  ;;  %v592_v48 = vrot.slane %v584_v40, %v3204_v9  ;;  %v599_v49 = vrot.slane %v585_v41, %v3204_v9 }
 0x3c9   :  { %v608_v51 = vrot.slane %v600_v42, %v3204_v9  ;;  %v615_v52 = vrot.slane %v601_v43, %v3204_v9  ;;  %v827_v53 = vpop.permute.xlu1 %826 }
 0x3ca   :  { %v652_v55 = vcombine.low %v628_v44, %v644_v46  ;;  %v653_v56 = vcombine.high %v628_v44, %v644_v46  ;;  %v668_v57 = vcombine.low %v635_v45, %v651_v47  ;;  %v669_v58 = vcombine.high %v635_v45, %v651_v47  ;;  %v829_v61 = vpop.permute.xlu0 %828 }
 0x3cb   :  { %v688_v62 = vcombine.low %v592_v48, %v599_v49  ;;  %v2570_v63 = vcombine.high %v592_v48, %v599_v49  ;;  %v704_v1 = vcombine.low %v608_v51, %v615_v52  ;;  %v2571_v0 = vcombine.high %v608_v51, %v615_v52 }
 0x3cc   :  { %v660_v3 = vrot.slane %v652_v55, %v3204_v9  ;;  %v667_v8 = vrot.slane %v653_v56, %v3204_v9  ;;  %v676_v10 = vrot.slane %v668_v57, %v3204_v9  ;;  %v683_v11 = vrot.slane %v669_v58, %v3204_v9 }
 0x3cd   :  { %v3307_v12 = vrot.slane %v688_v62, %v3190_v2  ;;  %v3310_v20 = vrot.slane %v2570_v63, %v3190_v2  ;;  %v3313_v21 = vrot.slane %v704_v1, %v3190_v2  ;;  %v3316_v22 = vrot.slane %v2571_v0, %v3190_v2  ;;  %v831_v23 = vpop.permute.xlu1 %830 }
 0x3ce   :  { %v756_v24 = vcombine.low %v660_v3, %v667_v8  ;;  %v2572_v25 = vcombine.high %v660_v3, %v667_v8  ;;  %v772_v26 = vcombine.low %v676_v10, %v683_v11  ;;  %v2573_v16 = vcombine.high %v676_v10, %v683_v11  ;;  %v833_v27 = vpop.permute.xlu0 %832 }
 0x3cf   :  { %v848_v28 = vcombine.low %v825_v39, %v833_v27  ;;  %v849_v29 = vcombine.high %v825_v39, %v833_v27  ;;  %v720_v30 = vcombine.low %v3307_v12, %v3310_v20  ;;  %v736_v31 = vcombine.low %v3313_v21, %v3316_v22 }
 0x3d0   :  { %v3323_v32 = vrot.slane %v756_v24, %v3190_v2  ;;  %v3326_v33 = vrot.slane %v2572_v25, %v3190_v2  ;;  %v3329_v34 = vrot.slane %v772_v26, %v3190_v2  ;;  %v3332_v35 = vrot.slane %v2573_v16, %v3190_v2 }
 0x3d1   :  { %v856_v36 = vrot.slane %v848_v28, %v3190_v2  ;;  %v863_v37 = vrot.slane %v849_v29, %v3190_v2  ;;  %v835_v38 = vpop.permute.xlu1 %834  ;;  %v728_v39 = vrot.slane %v720_v30, %v3204_v9  ;;  %v744_v40 = vrot.slane %v736_v31, %v3204_v9 }
 0x3d2   :  { %v916_v41 = vcombine.low %v827_v53, %v835_v38  ;;  %v917_v42 = vcombine.high %v827_v53, %v835_v38  ;;  %v837_v43 = vpop.permute.xlu0 %836  ;;  %v788_v44 = vcombine.low %v3323_v32, %v3326_v33  ;;  %v804_v45 = vcombine.low %v3329_v34, %v3332_v35 }
 0x3d3   :  { %v864_v46 = vcombine.low %v829_v61, %v837_v43  ;;  %v865_v47 = vcombine.high %v829_v61, %v837_v43  ;;  %v752_v48 = vcombine.low %v728_v39, %v744_v40  ;;  %v753_v49 = vcombine.high %v728_v39, %v744_v40 }
 0x3d4   :  { %v924_v51 = vrot.slane %v916_v41, %v3190_v2  ;;  %v931_v52 = vrot.slane %v917_v42, %v3190_v2  ;;  %v796_v55 = vrot.slane %v788_v44, %v3204_v9  ;;  %v812_v56 = vrot.slane %v804_v45, %v3204_v9 }
 0x3d5   :  { %v872_v53 = vrot.slane %v864_v46, %v3190_v2  ;;  %v879_v57 = vrot.slane %v865_v47, %v3190_v2  ;;  %v839_v58 = vpop.permute.xlu1 %838  ;;  %v721_v62 = vcombine.high %v3307_v12, %v3310_v20  ;;  %v737_v61 = vcombine.high %v3313_v21, %v3316_v22 }
 0x3d6   :  { %v932_v63 = vcombine.low %v831_v23, %v839_v58  ;;  %v933_v1 = vcombine.high %v831_v23, %v839_v58  ;;  %v820_v0 = vcombine.low %v796_v55, %v812_v56  ;;  %v821_v3 = vcombine.high %v796_v55, %v812_v56 }
 0x3d7   :  { %v880_v8 = vcombine.low %v856_v36, %v872_v53  ;;  %v881_v10 = vcombine.high %v856_v36, %v872_v53  ;;  %v896_v11 = vcombine.low %v863_v37, %v879_v57  ;;  %v897_v24 = vcombine.high %v863_v37, %v879_v57 }
 0x3d8   :  { %v940_v26 = vrot.slane %v932_v63, %v3190_v2  ;;  %v947_v12 = vrot.slane %v933_v1, %v3190_v2  ;;  %v2795_v20 = vpack.c.bf16 %v820_v0, %v752_v48  ;;  %v2801_v21 = vpack.c.bf16 %v821_v3, %v753_v49 }
 0x3d9   :  { %v888_v22 = vrot.slane %v880_v8, %v3204_v9  ;;  %v895_v23 = vrot.slane %v881_v10, %v3204_v9  ;;  %v904_v16 = vrot.slane %v896_v11, %v3204_v9  ;;  %v911_v27 = vrot.slane %v897_v24, %v3204_v9 }
 0x3da   :  { %v948_v28 = vcombine.low %v924_v51, %v940_v26  ;;  %v949_v29 = vcombine.high %v924_v51, %v940_v26  ;;  %v964_v30 = vcombine.low %v931_v52, %v947_v12  ;;  %v965_v31 = vcombine.high %v931_v52, %v947_v12  ;;  %2797 = vmatprep.subr.msk.bf16.mxu1 %vm3354_vm2, %v2795_v20 }
 0x3db   :  { %v984_v36 = vcombine.low %v888_v22, %v895_v23  ;;  %v2574_v37 = vcombine.high %v888_v22, %v895_v23  ;;  %v1000_v38 = vcombine.low %v904_v16, %v911_v27  ;;  %v2575_v39 = vcombine.high %v904_v16, %v911_v27  ;;  %2803 = vmatprep.subr.msk.bf16.mxu0 %vm3354_vm2, %v2801_v21 }
 0x3dc   :  { %v956_v40 = vrot.slane %v948_v28, %v3204_v9  ;;  %v963_v41 = vrot.slane %v949_v29, %v3204_v9  ;;  %v972_v42 = vrot.slane %v964_v30, %v3204_v9  ;;  %v979_v43 = vrot.slane %v965_v31, %v3204_v9  ;;  %2800 = vmatpush3.bf16.xpose.msk.msra.mxu1 %vm3354_vm2, %v2795_v20 }
 0x3dd   :  { %v991_v44 = vrot.slane %v984_v36, %v3190_v2  ;;  %v999_v45 = vrot.slane %v2574_v37, %v3190_v2  ;;  %v1007_v46 = vrot.slane %v1000_v38, %v3190_v2  ;;  %v1015_v47 = vrot.slane %v2575_v39, %v3190_v2  ;;  %2806 = vmatpush3.bf16.xpose.msk.msra.mxu0 %vm3354_vm2, %v2801_v21 }
 0x3de   :  { %v1052_v48 = vcombine.low %v956_v40, %v963_v41  ;;  %v2576_v49 = vcombine.high %v956_v40, %v963_v41  ;;  %v1068_v51 = vcombine.low %v972_v42, %v979_v43  ;;  %v2577_v52 = vcombine.high %v972_v42, %v979_v43  ;;  %v1469_v40 = vld [vmem:[#allocation8] sm:$0xff]  ;;  %v1470_v42 = vld [vmem:[#allocation8 + $0x8] sm:$0xff] }
 0x3df   :  { %v735_v55 = vrot.slane %v721_v62, %v3204_v9  ;;  %v751_v56 = vrot.slane %v737_v61, %v3204_v9  ;;  %v789_v53 = vcombine.high %v3323_v32, %v3326_v33  ;;  %v805_v57 = vcombine.high %v3329_v34, %v3332_v35 }
 0x3e0   :  { %v1059_v58 = vrot.slane %v1052_v48, %v3190_v2  ;;  %v1067_v63 = vrot.slane %v2576_v49, %v3190_v2  ;;  %v1075_v1 = vrot.slane %v1068_v51, %v3190_v2  ;;  %v1083_v0 = vrot.slane %v2577_v52, %v3190_v2  ;;  %v1474_v52 = vld [vmem:[#allocation8 + $0x28] sm:$0xff] }
 0x3e1   :  { %v754_v3 = vcombine.low %v735_v55, %v751_v56  ;;  %v803_v8 = vrot.slane %v789_v53, %v3204_v9  ;;  %v819_v62 = vrot.slane %v805_v57, %v3204_v9  ;;  %v755_v61 = vcombine.high %v735_v55, %v751_v56  ;;  %v1476_v56 = vld [vmem:[#allocation8 + $0x38] sm:$0xff] }
 0x3e2   :  { %v1016_v10 = vcombine.low %v991_v44, %v999_v45  ;;  %v1032_v11 = vcombine.low %v1007_v46, %v1015_v47  ;;  %v1084_v32 = vcombine.low %v1059_v58, %v1067_v63  ;;  %v1100_v33 = vcombine.low %v1075_v1, %v1083_v0 }
 0x3e3   :  { %v822_v24 = vcombine.low %v803_v8, %v819_v62  ;;  %v823_v34 = vcombine.high %v803_v8, %v819_v62  ;;  %2695 = vmatmul.mubr.msk.f32.vlgmr.msra.gmra.mrb[2].mxu1 %vm1120_vm1, %v524_v6  ;;  %v1017_v35 = vcombine.high %v991_v44, %v999_v45  ;;  %v1033_v26 = vcombine.high %v1007_v46, %v1015_v47  ;;  %v1471_v45 = vld [vmem:[#allocation8 + $0x10] sm:$0xff] }
 0x3e4   :  { %2702 = vmatmul.mubr.msk.f32.vlgmr.msra.gmra.mrb[0].mxu0 %vm1120_vm1, %v525_v17  ;;  %2708 = vmatprep.mubr.msk.f32.mxu1 %vm1120_vm1, %v458_v4  ;;  %v1024_v12 = vrot.slane %v1016_v10, %v3204_v9  ;;  %v1040_v20 = vrot.slane %v1032_v11, %v3204_v9  ;;  %v1092_v21 = vrot.slane %v1084_v32, %v3204_v9 }
 0x3e5   :  { %v2807_v22 = vpack.c.bf16 %v822_v24, %v754_v3  ;;  %v2813_v6 = vpack.c.bf16 %v823_v34, %v755_v61  ;;  %2715 = vmatprep.mubr.msk.f32.mxu0 %vm1120_vm1, %v459_v7  ;;  %v1108_v5 = vrot.slane %v1100_v33, %v3204_v9  ;;  %v1031_v13 = vrot.slane %v1017_v35, %v3204_v9 }
 0x3e6   :  { %v1047_v17 = vrot.slane %v1033_v26, %v3204_v9  ;;  %v1085_v4 = vcombine.high %v1059_v58, %v1067_v63  ;;  %v1101_v23 = vcombine.high %v1075_v1, %v1083_v0  ;;  %v1048_v16 = vcombine.low %v1024_v12, %v1040_v20 }
 0x3e7   :  { %2809 = vmatprep.subr.msk.bf16.mxu1 %vm3354_vm2, %v2807_v22  ;;  %2815 = vmatprep.subr.msk.bf16.mxu0 %vm3354_vm2, %v2813_v6  ;;  %v1116_v27 = vcombine.low %v1092_v21, %v1108_v5  ;;  %v1117_v36 = vcombine.high %v1092_v21, %v1108_v5  ;;  %v1049_v39 = vcombine.high %v1024_v12, %v1040_v20 }
 0x3e8   :  { %2812 = vmatpush3.bf16.xpose.msk.msra.mxu1 %vm3354_vm2, %v2807_v22  ;;  %2818 = vmatpush3.bf16.xpose.msk.msra.mxu0 %vm3354_vm2, %v2813_v6  ;;  %v1099_v59 = vrot.slane %v1085_v4, %v3204_v9  ;;  %v1115_v60 = vrot.slane %v1101_v23, %v3204_v9  ;;  %v1051_v28 = vcombine.high %v1031_v13, %v1047_v17 }
 0x3e9   :  { %v2819_v7 = vpack.c.bf16 %v1116_v27, %v1048_v16  ;;  %v1050_v29 = vcombine.low %v1031_v13, %v1047_v17  ;;  %v2823_v25 = vpack.c.bf16 %v1117_v36, %v1049_v39 }
 0x3ea   :  { %v1118_v30 = vcombine.low %v1099_v59, %v1115_v60  ;;  %v1119_v31 = vcombine.high %v1099_v59, %v1115_v60 }
 0x3eb   :  { %2820 = vmatprep.subr.bf16.mxu1 %v2819_v7 }
 0x3ec   :  { %v2827_v37 = vpack.c.bf16 %v1118_v30, %v1050_v29  ;;  %v2831_v38 = vpack.c.bf16 %v1119_v31, %v1051_v28 }
 0x3ee   :  { %2828 = vmatprep.subr.bf16.mxu0 %v2827_v37 }
 0x3ef   :  { %2709 = vmatmul.mubr.msk.f32.vlgmr.msra.gmra.mrb[4].mxu1 %vm1120_vm1, %v526_v18  ;;  %2716 = vmatmul.mubr.msk.f32.vlgmr.msra.gmra.mrb[2].mxu0 %vm1120_vm1, %v527_v19  ;;  %v1472_v18 = vld [vmem:[#allocation8 + $0x18] sm:$0xff]  ;;  %v1475_v19 = vld [vmem:[#allocation8 + $0x30] sm:$0xff] }
 0x3f0   :  { %2822 = vmatpush3.bf16.msra.mxu1 %v2819_v7  ;;  %2830 = vmatpush3.bf16.msra.mxu0 %v2827_v37 }
 0x3f1   :  { %2824 = vmatprep.subr.bf16.mxu1 %v2823_v25 }
 0x4b6   :  { %v2696_v41 = vpop.f32.mrb[2].mxu1 }
 0x4b7   :  { %v2703_v43 = vpop.f32.mrb[0].mxu0  ;;  %v1199_v44 = vpop.f32.mrb[3].mxu1  ;;  %v1478_v48 = vmul.f32 %v2696_v41, %v1470_v42 }
 0x4b8   :  { %v1477_v46 = vmul.f32 %v1469_v40, %v1199_v44  ;;  %v1286_v47 = vpop.f32.mrb[1].mxu0  ;;  %v1480_v14 = vmul.f32 %v2703_v43, %v1472_v18 }
 0x4b9   :  { %v1479_v49 = vmul.f32 %v1471_v45, %v1286_v47 }
 0x4ba   :  { %2722 = vmatprep.mubr.msk.f32.mxu1 %vm1485_vm3, %v1477_v46 }
 0x4bb   :  { %2723 = vmatmul.mubr.msk.f32.vlgmr.msra.gmra.mrb[6].mxu1 %vm1485_vm3, %v1478_v48 }
 0x4bc   :  { %2826 = vmatpush3.bf16.msra.mxu1 %v2823_v25  ;;  %2729 = vmatprep.mubr.msk.f32.mxu1 %vm1485_vm3, %v1479_v49 }
 0x4bd   :  { %2832 = vmatprep.subr.bf16.mxu1 %v2831_v38 }
 0x4bf   :  { %2730 = vmatmul.mubr.msk.f32.vlgmr.msra.gmra.mrb[8].mxu1 %vm1485_vm3, %v1480_v14 }
 0x4c0   :  { %2834 = vmatpush3.bf16.msra.mxu1 %v2831_v38 }
 0x4c2   :  { %v2710_v51 = vpop.f32.mrb[4].mxu1  ;;  %v2717_v55 = vpop.f32.mrb[2].mxu0 }
 0x4c3   :  { %v1373_v53 = vpop.f32.mrb[5].mxu1  ;;  %v1460_v57 = vpop.f32.mrb[3].mxu0  ;;  %v1482_v1 = vmul.f32 %v2710_v51, %v1474_v52  ;;  %v1484_v0 = vmul.f32 %v2717_v55, %v1476_v56 }
 0x4c4   :  { %v1481_v58 = vmul.f32 %v1473_v15, %v1373_v53  ;;  %v1483_v63 = vmul.f32 %v1475_v19, %v1460_v57 }
 0x4c6   :  { %2736 = vmatprep.mubr.msk.f32.mxu0 %vm1485_vm3, %v1481_v58  ;;  %2743 = vmatprep.mubr.msk.f32.mxu1 %vm1485_vm3, %v1483_v63 }
 0x4c7   :  { %2737 = vmatmul.mubr.msk.f32.vlgmr.msra.gmra.mrb[4].mxu0 %vm1485_vm3, %v1482_v1  ;;  %2744 = vmatmul.mubr.msk.f32.vlgmr.msra.gmra.mrb[10].mxu1 %vm1485_vm3, %v1484_v0 }
 0x58e   :  { %v2724_v3 = vpop.f32.mrb[6].mxu1 }
 0x58f   :  { %v1558_v8 = vpop.f32.mrb[7].mxu1  ;;  %v1813_v62 = vsel %vm1120_vm1, %v2724_v3, 0.0 }
 0x590   :  { %1814 = vadd.xlane.f32.xlu0 %v1813_v62  ;;  %v1810_v11 = vsel %vm1120_vm1, %v1558_v8, 0.0 }
 0x592   :  { %v2731_v61 = vpop.f32.mrb[8].mxu1 }
 0x593   :  { %v1639_v10 = vpop.f32.mrb[9].mxu1  ;;  %v1819_v32 = vsel %vm1120_vm1, %v2731_v61, 0.0 }
 0x594   :  { %1811 = vadd.xlane.f32.xlu0 %v1810_v11  ;;  %1820 = vadd.xlane.f32.xlu1 %v1819_v32  ;;  %v1816_v33 = vsel %vm1120_vm1, %v1639_v10, 0.0 }
 0x598   :  { %1817 = vadd.xlane.f32.xlu1 %v1816_v33 }
 0x59a   :  { %v2738_v24 = vpop.f32.mrb[4].mxu0  ;;  %v2745_v34 = vpop.f32.mrb[10].mxu1 }
 0x59b   :  { %v1720_v35 = vpop.f32.mrb[5].mxu0  ;;  %v1801_v26 = vpop.f32.mrb[11].mxu1  ;;  %v1831_v12 = vsel %vm1120_vm1, %v2745_v34, 0.0  ;;  %v1825_v22 = vsel %vm1120_vm1, %v2738_v24, 0.0 }
 0x59c   :  { %v1822_v20 = vsel %vm1120_vm1, %v1720_v35, 0.0  ;;  %1832 = vadd.xlane.f32.xlu1 %v1831_v12  ;;  %v1828_v21 = vsel %vm1120_vm1, %v1801_v26, 0.0 }
 0x59d   :  { %1823 = vadd.xlane.f32.xlu0 %v1822_v20  ;;  %v2606_v20 = vmul.f32 -1.442695, %v3170_v50 }
 0x5a1   :  { %1829 = vadd.xlane.f32.xlu0 %v1828_v21 }
 0x5a5   :  { %1826 = vadd.xlane.f32.xlu0 %v1825_v22 }
 0x61d   :  { %v1815_v6 = vpop.xlane.xlu0 %1814 }
 0x61e   :  { %v1836_v5 = vmul.f32 0.125, %v1815_v6 }
 0x620   :  { %v3448_v13 = vsub.f32 %v2724_v3, %v1836_v5 }
 0x621   :  { %v1812_v17 = vpop.xlane.xlu0 %1811  ;;  %v1821_v4 = vpop.xlane.xlu1 %1820 }
 0x622   :  { %v1835_v23 = vmul.f32 0.125, %v1812_v17  ;;  %v1838_v16 = vmul.f32 0.125, %v1821_v4  ;;  %v1852_v27 = vmul.f32 %v3448_v13, %v3448_v13 }
 0x624   :  { %v3452_v59 = vsub.f32 %v1558_v8, %v1835_v23  ;;  %v3454_v60 = vsub.f32 %v2731_v61, %v1838_v16  ;;  %v1862_v7 = vsel %vm1120_vm1, %v1852_v27, 0.0 }
 0x625   :  { %v1818_v28 = vpop.xlane.xlu1 %1817  ;;  %1863 = vadd.xlane.f32.xlu0 %v1862_v7 }
 0x626   :  { %v1837_v29 = vmul.f32 0.125, %v1818_v28  ;;  %v1854_v30 = vmul.f32 %v3454_v60, %v3454_v60  ;;  %v1851_v31 = vmul.f32 %v3452_v59, %v3452_v59 }
 0x628   :  { %v3461_v36 = vsub.f32 %v1639_v10, %v1837_v29  ;;  %v1868_v37 = vsel %vm1120_vm1, %v1854_v30, 0.0  ;;  %v1859_v38 = vsel %vm1120_vm1, %v1851_v31, 0.0  ;;  %v2607_v31 = vmul.f32 -1.442695, %v3173_v54 }
 0x629   :  { %1869 = vadd.xlane.f32.xlu1 %v1868_v37  ;;  %1860 = vadd.xlane.f32.xlu0 %v1859_v38  ;;  %v1833_v25 = vpop.xlane.xlu1 %1832 }
 0x62a   :  { %v1824_v39 = vpop.xlane.xlu0 %1823  ;;  %v1853_v40 = vmul.f32 %v3461_v36, %v3461_v36  ;;  %v1842_v44 = vmul.f32 0.125, %v1833_v25 }
 0x62b   :  { %v1839_v41 = vmul.f32 0.125, %v1824_v39 }
 0x62c   :  { %v1865_v42 = vsel %vm1120_vm1, %v1853_v40, 0.0  ;;  %v3468_v48 = vsub.f32 %v2745_v34, %v1842_v44 }
 0x62d   :  { %v1847_v43 = vsub.f32 %v1720_v35, %v1839_v41  ;;  %1866 = vadd.xlane.f32.xlu1 %v1865_v42 }
 0x62e   :  { %v1830_v45 = vpop.xlane.xlu0 %1829  ;;  %v1858_v55 = vmul.f32 %v3468_v48, %v3468_v48 }
 0x62f   :  { %v1841_v46 = vmul.f32 0.125, %v1830_v45  ;;  %v1855_v47 = vmul.f32 %v1847_v43, %v1847_v43 }
 0x630   :  { %v1880_v53 = vsel %vm1120_vm1, %v1858_v55, 0.0 }
 0x631   :  { %v1849_v18 = vsub.f32 %v1801_v26, %v1841_v46  ;;  %v1871_v49 = vsel %vm1120_vm1, %v1855_v47, 0.0 }
 0x632   :  { %1872 = vadd.xlane.f32.xlu0 %v1871_v49  ;;  %v1827_v14 = vpop.xlane.xlu0 %1826 }
 0x633   :  { %v1840_v15 = vmul.f32 0.125, %v1827_v14  ;;  %v1857_v19 = vmul.f32 %v1849_v18, %v1849_v18 }
 0x635   :  { %v3471_v51 = vsub.f32 %v2738_v24, %v1840_v15  ;;  %v1877_v52 = vsel %vm1120_vm1, %v1857_v19, 0.0 }
 0x636   :  { %1878 = vadd.xlane.f32.xlu1 %v1877_v52 }
 0x637   :  { %v1856_v56 = vmul.f32 %v3471_v51, %v3471_v51 }
 0x639   :  { %v1874_v57 = vsel %vm1120_vm1, %v1856_v56, 0.0 }
 0x63a   :  { %1881 = vadd.xlane.f32.xlu1 %v1880_v53  ;;  %1875 = vadd.xlane.f32.xlu0 %v1874_v57 }
 0x6b2   :  { %v1864_v58 = vpop.xlane.xlu0 %1863 }
 0x6b3   :  { %v1884_v24 = vmul.f32 0.125, %v1864_v58 }
 0x6b5   :  { %v1892_v21 = vadd.f32 1e-06, %v1884_v24 }
 0x6b6   :  { %v1870_v63 = vpop.xlane.xlu1 %1869  ;;  %v1861_v1 = vpop.xlane.xlu0 %1860 }
 0x6b7   :  { %v1883_v0 = vmul.f32 0.125, %v1861_v1  ;;  %v1886_v11 = vmul.f32 0.125, %v1870_v63 }
 0x6b9   :  { %v1891_v62 = vadd.f32 1e-06, %v1883_v0  ;;  %v1894_v26 = vadd.f32 1e-06, %v1886_v11 }
 0x6ba   :  { %v1867_v3 = vpop.xlane.xlu1 %1866 }
 0x6bb   :  { %v1885_v8 = vmul.f32 0.125, %v1867_v3  ;;  %2890 = vrsqrt.f32 %v1891_v62 }
 0x6bd   :  { %v1893_v32 = vadd.f32 1e-06, %v1885_v8 }
 0x6bf   :  { %v1873_v61 = vpop.xlane.xlu0 %1872 }
 0x6c0   :  { %v1887_v10 = vmul.f32 0.125, %v1873_v61 }
 0x6c2   :  { %v1895_v33 = vadd.f32 1e-06, %v1887_v10 }
 0x6c3   :  { %v1879_v34 = vpop.xlane.xlu1 %1878 }
 0x6c4   :  { %2892 = vrsqrt.f32 %v1895_v33  ;;  %v1889_v35 = vmul.f32 0.125, %v1879_v34 }
 0x6c5   :  { %2894 = vrsqrt.f32 %v1893_v32  ;;  %v2891_v16 = vpop.eup %2890 }
 0x6c6   :  { %v1897_v12 = vadd.f32 1e-06, %v1889_v35  ;;  %v1907_v29 = vmul.f32 %v2891_v16, %v3452_v59 }
 0x6c7   :  { %v1882_v22 = vpop.xlane.xlu1 %1881  ;;  %v1876_v6 = vpop.xlane.xlu0 %1875 }
 0x6c8   :  { %2896 = vrsqrt.f32 %v1897_v12  ;;  %v1890_v5 = vmul.f32 0.125, %v1882_v22  ;;  %v1888_v17 = vmul.f32 0.125, %v1876_v6 }
 0x6c9   :  { %2898 = vrsqrt.f32 %v1894_v26 }
 0x6ca   :  { %v1898_v4 = vadd.f32 1e-06, %v1890_v5  ;;  %v1896_v23 = vadd.f32 1e-06, %v1888_v17  ;;  %2900 = vpow2.f32 %v2606_v20 }
 0x6cb   :  { %2902 = vrsqrt.f32 %v1892_v21 }
 0x6cc   :  { %2904 = vrsqrt.f32 %v1898_v4 }
 0x6cd   :  { %2906 = vrsqrt.f32 %v1896_v23 }
 0x6ce   :  { %v2893_v27 = vpop.eup %2892  ;;  %2908 = vpow2.f32 %v2607_v31 }
 0x6cf   :  { %v1911_v7 = vmul.f32 %v2893_v27, %v1847_v43  ;;  %v2895_v28 = vpop.eup %2894 }
 0x6d0   :  { %v1909_v38 = vmul.f32 %v2895_v28, %v3461_v36 }
 0x6d1   :  { %v1915_v39 = vcombine.low %v1907_v29, %v1911_v7  ;;  %v1916_v41 = vcombine.high %v1907_v29, %v1911_v7 }
 0x6d2   :  { %v2897_v30 = vpop.eup %2896 }
 0x6d3   :  { %v2899_v37 = vpop.eup %2898  ;;  %v1913_v25 = vmul.f32 %v2897_v30, %v1849_v18  ;;  %v1923_v49 = vrot.slane %v1915_v39, %v3190_v2  ;;  %v1930_v19 = vrot.slane %v1916_v41, %v3190_v2 }
 0x6d4   :  { %v2901_v40 = vpop.eup %2900  ;;  %v1910_v47 = vmul.f32 %v2899_v37, %v3454_v60 }
 0x6d5   :  { %v2903_v42 = vpop.eup %2902  ;;  %v1931_v44 = vcombine.low %v1909_v38, %v1913_v25  ;;  %v1932_v45 = vcombine.high %v1909_v38, %v1913_v25  ;;  %v2224_v52 = vadd.f32 1.0, %v2901_v40 }
 0x6d6   :  { %v2905_v46 = vpop.eup %2904  ;;  %v1908_v18 = vmul.f32 %v2903_v42, %v3448_v13 }
 0x6d7   :  { %v2907_v43 = vpop.eup %2906  ;;  %v1914_v59 = vmul.f32 %v2905_v46, %v3468_v48  ;;  %v1939_v14 = vrot.slane %v1931_v44, %v3190_v2  ;;  %v1946_v36 = vrot.slane %v1932_v45, %v3190_v2  ;;  %2910 = vrcp.f32 %v2224_v52 }
 0x6d8   :  { %v1912_v15 = vmul.f32 %v2907_v43, %v3471_v51  ;;  %v2909_v21 = vpop.eup %2908 }
 0x6d9   :  { %v1999_v55 = vcombine.low %v1910_v47, %v1914_v59  ;;  %v2000_v56 = vcombine.high %v1910_v47, %v1914_v59  ;;  %v1947_v60 = vcombine.low %v1923_v49, %v1939_v14  ;;  %v1948_v53 = vcombine.high %v1923_v49, %v1939_v14 }
 0x6da   :  { %v1983_v57 = vcombine.low %v1908_v18, %v1912_v15  ;;  %v1984_v58 = vcombine.high %v1908_v18, %v1912_v15  ;;  %v1963_v48 = vcombine.low %v1930_v19, %v1946_v36  ;;  %v1964_v63 = vcombine.high %v1930_v19, %v1946_v36  ;;  %v79_v18 = vld [vmem:[#allocation5 + $0x20] sm:$0xff]  ;;  %v80_v15 = vld [vmem:[#allocation5 + $0x28] sm:$0xff] }
 0x6db   :  { %v1955_v1 = vrot.slane %v1947_v60, %v3204_v9  ;;  %v1962_v0 = vrot.slane %v1948_v53, %v3204_v9  ;;  %v2007_v3 = vrot.slane %v1999_v55, %v3190_v2  ;;  %v2014_v13 = vrot.slane %v2000_v56, %v3190_v2 }
 0x6dc   :  { %v1971_v51 = vrot.slane %v1963_v48, %v3204_v9  ;;  %v1978_v8 = vrot.slane %v1964_v63, %v3204_v9  ;;  %v1991_v62 = vrot.slane %v1983_v57, %v3190_v2  ;;  %v1998_v61 = vrot.slane %v1984_v58, %v3190_v2  ;;  %v81_v48 = vld [vmem:[#allocation5 + $0x30] sm:$0xff]  ;;  %v82_v63 = vld [vmem:[#allocation5 + $0x38] sm:$0xff] }
 0x6dd   :  { %v2051_v10 = vcombine.low %v1955_v1, %v1962_v0  ;;  %v2602_v11 = vcombine.high %v1955_v1, %v1962_v0  ;;  %v2835_v52 = vpack.c.bf16 %v80_v15, %v79_v18  ;;  %v2839_v1 = vpack.c.bf16 %v82_v63, %v81_v48  ;;  %v89_v63 = vld [vmem:[#allocation5 + $0x70] sm:$0xff] }
 0x6de   :  { %v2067_v32 = vcombine.low %v1971_v51, %v1978_v8  ;;  %v2603_v33 = vcombine.high %v1971_v51, %v1978_v8  ;;  %v2015_v24 = vcombine.low %v1991_v62, %v2007_v3  ;;  %v2016_v34 = vcombine.high %v1991_v62, %v2007_v3 }
 0x6df   :  { %v2058_v35 = vrot.slane %v2051_v10, %v3190_v2  ;;  %v2066_v26 = vrot.slane %v2602_v11, %v3190_v2  ;;  %v2031_v12 = vcombine.low %v1998_v61, %v2014_v13  ;;  %v2032_v20 = vcombine.high %v1998_v61, %v2014_v13  ;;  %2836 = vmatprep.subr.bf16.mxu0 %v2835_v52 }
 0x6e0   :  { %v2074_v22 = vrot.slane %v2067_v32, %v3190_v2  ;;  %v2082_v6 = vrot.slane %v2603_v33, %v3190_v2  ;;  %v2023_v5 = vrot.slane %v2015_v24, %v3204_v9  ;;  %v2030_v17 = vrot.slane %v2016_v34, %v3204_v9  ;;  %2838 = vmatpush3.bf16.msra.mxu0 %v2835_v52 }
 0x6e1   :  { %v2083_v4 = vcombine.low %v2058_v35, %v2066_v26  ;;  %v2084_v23 = vcombine.high %v2058_v35, %v2066_v26  ;;  %v2039_v16 = vrot.slane %v2031_v12, %v3204_v9  ;;  %v2046_v27 = vrot.slane %v2032_v20, %v3204_v9  ;;  %v2911_v59 = vpop.eup %2910  ;;  %2840 = vmatprep.subr.bf16.mxu0 %v2839_v1 }
 0x6e2   :  { %v2099_v7 = vcombine.low %v2074_v22, %v2082_v6  ;;  %v2100_v28 = vcombine.high %v2074_v22, %v2082_v6  ;;  %v2119_v29 = vcombine.low %v2023_v5, %v2030_v17  ;;  %v2604_v30 = vcombine.high %v2023_v5, %v2030_v17  ;;  %v2608_v6 = vld [vmem:[#allocation7 + $0x1] ss:$0 sm:$0xff] }
 0x6e3   :  { %v2091_v31 = vrot.slane %v2083_v4, %v3204_v9  ;;  %v2135_v37 = vcombine.low %v2039_v16, %v2046_v27  ;;  %v2605_v38 = vcombine.high %v2039_v16, %v2046_v27  ;;  %v2098_v41 = vrot.slane %v2084_v23, %v3204_v9  ;;  %v2926_v16 = vld [vmem:[#allocation2 + $0x8] sm:$0xff] }
 0x6e4   :  { %v2107_v39 = vrot.slane %v2099_v7, %v3204_v9  ;;  %v2126_v25 = vrot.slane %v2119_v29, %v3190_v2  ;;  %v2134_v40 = vrot.slane %v2604_v30, %v3190_v2  ;;  %v2114_v47 = vrot.slane %v2100_v28, %v3204_v9  ;;  %2842 = vmatpush3.bf16.msra.mxu0 %v2839_v1  ;;  %v2927_v7 = vld [vmem:[#allocation2] sm:$0xff]  ;;  %v90_v1 = vld [vmem:[#allocation5 + $0x78] sm:$0xff] }
 0x6e5   :  { %v2142_v42 = vrot.slane %v2135_v37, %v3190_v2  ;;  %v2150_v44 = vrot.slane %v2605_v38, %v3190_v2  ;;  %v2225_v2 = vadd.f32 1.0, %v2909_v21  ;;  %v2230_v0 = vmul.f32 %v2911_v59, %v3170_v50  ;;  %v85_v59 = vld [vmem:[#allocation5 + $0x50] sm:$0xff] }
 0x6e6   :  { %v2116_v45 = vcombine.high %v2091_v31, %v2107_v39  ;;  %v2115_v46 = vcombine.low %v2091_v31, %v2107_v39  ;;  %v2151_v43 = vcombine.low %v2126_v25, %v2134_v40  ;;  %v2152_v14 = vcombine.high %v2126_v25, %v2134_v40 }
 0x6e7   :  { %v2167_v49 = vcombine.low %v2142_v42, %v2150_v44  ;;  %v2168_v36 = vcombine.high %v2142_v42, %v2150_v44  ;;  %v2118_v56 = vcombine.high %v2098_v41, %v2114_v47  ;;  %2912 = vrcp.f32 %v2225_v2 }
 0x6e8   :  { %2189 = vrot.lane.b32.xlu0 %v2116_v45, %s3049_s28  ;;  %v2159_v19 = vrot.slane %v2151_v43, %v3204_v9  ;;  %v2166_v57 = vrot.slane %v2152_v14, %v3204_v9 }
 0x6e9   :  { %v2175_v55 = vrot.slane %v2167_v49, %v3204_v9  ;;  %v2182_v58 = vrot.slane %v2168_v36, %v3204_v9  ;;  %v2117_v9 = vcombine.low %v2098_v41, %v2114_v47  ;;  %v84_v47 = vld [vmem:[#allocation5 + $0x48] sm:$0xff]  ;;  %v86_v49 = vld [vmem:[#allocation5 + $0x58] sm:$0xff] }
 0x6ea   :  { %v2847_v14 = vpack.c.bf16 %v86_v49, %v85_v59 }
 0x6eb   :  { %v2184_v60 = vcombine.high %v2159_v19, %v2175_v55  ;;  %v2183_v53 = vcombine.low %v2159_v19, %v2175_v55  ;;  %v2185_v3 = vcombine.low %v2166_v57, %v2182_v58  ;;  %v2186_v13 = vcombine.high %v2166_v57, %v2182_v58  ;;  %v87_v57 = vld [vmem:[#allocation5 + $0x60] sm:$0xff]  ;;  %v88_v58 = vld [vmem:[#allocation5 + $0x68] sm:$0xff] }
 0x6ec   :  { %2205 = vrot.lane.b32.xlu0 %v2118_v56, %s3061_s17  ;;  %v2851_v48 = vpack.c.bf16 %v88_v58, %v87_v57 }
 0x6ed   :  { %2191 = vrot.lane.b32.xlu1 %v2184_v60, %s3049_s28 }
 0x6ee   :  { %2852 = vmatprep.subr.bf16.mxu0 %v2851_v48 }
 0x6f0   :  { %2234 = vrot.lane.b32.xlu0 %v2230_v0, %s3062_s19  ;;  %v2855_v0 = vpack.c.bf16 %v90_v1, %v89_v63 }
 0x6f1   :  { %2199 = vrot.lane.b32.xlu1 %v2185_v3, %s3063_s20  ;;  %v2913_v51 = vpop.eup %2912  ;;  %v91_v3 = vld [vmem:[#allocation5 + $0x80] sm:$0xff] }
 0x6f2   :  { %v2231_v8 = vmul.f32 %v2913_v51, %v3173_v54 }
 0x6f5   :  { %2207 = vrot.lane.b32.xlu1 %v2186_v13, %s3061_s17  ;;  %v92_v13 = vld [vmem:[#allocation5 + $0x88] sm:$0xff] }
 0x6f6   :  { %v2859_v51 = vpack.c.bf16 %v92_v13, %v91_v3 }
 0x6f9   :  { %2197 = vrot.lane.b32.xlu1 %v2117_v9, %s3063_s20  ;;  %v93_v9 = vld [vmem:[#allocation5 + $0x90] sm:$0xff] }
 0x6fd   :  { %2236 = vrot.lane.b32.xlu1 %v2231_v8, %s3062_s19  ;;  %v94_v8 = vld [vmem:[#allocation5 + $0x98] sm:$0xff] }
 0x75a   :  { %v2190_v61 = vpop.permute.xlu0 %2189 }
 0x75b   :  { %v2211_v32 = vsel %vm1120_vm1, %v2115_v46, %v2190_v61  ;;  %v83_v46 = vld [vmem:[#allocation5 + $0x40] sm:$0xff] }
 0x75c   :  { %v2843_v43 = vpack.c.bf16 %v84_v47, %v83_v46  ;;  %v2611_v61 = vld [vmem:[#allocation7 + $0x2] ss:$0 sm:$0xff] }
 0x75e   :  { %v2206_v50 = vpop.permute.xlu0 %2205  ;;  %2844 = vmatprep.subr.bf16.mxu1 %v2843_v43 }
 0x75f   :  { %v2192_v62 = vpop.permute.xlu1 %2191  ;;  %2846 = vmatpush3.bf16.msra.mxu1 %v2843_v43 }
 0x760   :  { %v2212_v34 = vsel %vm1120_vm1, %v2183_v53, %v2192_v62  ;;  %2848 = vmatprep.subr.bf16.mxu1 %v2847_v14  ;;  %v2863_v62 = vpack.c.bf16 %v94_v8, %v93_v9 }
 0x762   :  { %v2235_v35 = vpop.permute.xlu0 %2234 }
 0x763   :  { %v2200_v10 = vpop.permute.xlu1 %2199  ;;  %2850 = vmatpush3.bf16.msra.mxu1 %v2847_v14 }
 0x764   :  { %v2214_v12 = vsel %vm1485_vm3, %v2212_v34, %v2200_v10 }
 0x767   :  { %v2208_v11 = vpop.permute.xlu1 %2207 }
 0x768   :  { %v2217_v21 = vsel %vm2215_vm4, %v2214_v12, %v2208_v11 }
 0x76b   :  { %v2198_v33 = vpop.permute.xlu1 %2197 }
 0x76c   :  { %v2213_v24 = vsel %vm1485_vm3, %v2211_v32, %v2198_v33 }
 0x76d   :  { %v2216_v26 = vsel %vm2215_vm4, %v2213_v24, %v2206_v50 }
 0x76e   :  { %v2240_v20 = vmul.f32 %v2235_v35, %v2216_v26 }
 0x76f   :  { %v2237_v54 = vpop.permute.xlu1 %2236 }
 0x770   :  { %v2241_v22 = vmul.f32 %v2237_v54, %v2217_v21  ;;  %2754 = vmatprep.mubr.msk.f32.mxu0 %vm105_vm0, %v2240_v20 }
 0x772   :  { %2755 = vmatmul.mubr.msk.f32.vlgmr.msra.gmra.mrb[6].mxu0 %vm105_vm0, %v2241_v22 }
 0x773   :  { %2854 = vmatpush3.bf16.msra.mxu0 %v2851_v48 }
 0x774   :  { %2856 = vmatprep.subr.bf16.mxu0 %v2855_v0 }
 0x777   :  { %2858 = vmatpush3.bf16.msra.mxu0 %v2855_v0 }
 0x778   :  { %2860 = vmatprep.subr.bf16.mxu0 %v2859_v51 }
 0x77b   :  { %2862 = vmatpush3.bf16.msra.mxu0 %v2859_v51 }
 0x77c   :  { %2864 = vmatprep.subr.bf16.mxu0 %v2863_v62 }
 0x77f   :  { %2866 = vmatpush3.bf16.msra.mxu0 %v2863_v62 }
 0x845   :  { %v2756_v5 = vpop.f32.mrb[6].mxu0 }
 0x846   :  { %v2324_v17 = vadd.f32 %v2756_v5, %v2608_v6  ;;  %v2318_v4 = vpop.f32.mrb[7].mxu0 }
 0x847   :  { %v2319_v23 = vadd.f32 %v2608_v6, %v2318_v4  ;;  %v2616_v6 = vld [vmem:[#allocation7 + $0x3] ss:$0 sm:$0xff] }
 0x848   :  { %v3530_v27 = vadd.f32 %v2926_v16, %v2324_v17 }
 0x849   :  { %v3532_v28 = vadd.f32 %v2927_v7, %v2319_v23 }
 0x84a   :  { %v2332_v29 = vsel %vm105_vm0, %v3530_v27, 0.0 }
 0x84b   :  { %2333 = vadd.xlane.f32.xlu1 %v2332_v29  ;;  %v2329_v30 = vsel %vm105_vm0, %v3532_v28, 0.0 }
 0x84c   :  { %2330 = vadd.xlane.f32.xlu0 %v2329_v30 }
 0x8d8   :  { %v2334_v31 = vpop.xlane.xlu1 %2333 }
 0x8d9   :  { %v2336_v37 = vmul.f32 0.03125, %v2334_v31  ;;  %v2331_v38 = vpop.xlane.xlu0 %2330 }
 0x8da   :  { %v2335_v39 = vmul.f32 0.03125, %v2331_v38 }
 0x8db   :  { %v2338_v25 = vsub.f32 %v3530_v27, %v2336_v37 }
 0x8dc   :  { %v2337_v40 = vsub.f32 %v3532_v28, %v2335_v39 }
 0x8dd   :  { %v2340_v44 = vmul.f32 %v2338_v25, %v2338_v25 }
 0x8de   :  { %v2339_v41 = vmul.f32 %v2337_v40, %v2337_v40 }
 0x8df   :  { %v2344_v45 = vsel %vm105_vm0, %v2340_v44, 0.0 }
 0x8e0   :  { %v2341_v42 = vsel %vm105_vm0, %v2339_v41, 0.0 }
 0x8e1   :  { %2342 = vadd.xlane.f32.xlu0 %v2341_v42 }
 0x8e5   :  { %2345 = vadd.xlane.f32.xlu0 %v2344_v45 }
 0x96e   :  { %v2343_v36 = vpop.xlane.xlu0 %2342 }
 0x96f   :  { %v2347_v18 = vmul.f32 0.03125, %v2343_v36 }
 0x971   :  { %v2349_v15 = vadd.f32 1e-06, %v2347_v18 }
 0x972   :  { %v2346_v19 = vpop.xlane.xlu0 %2345 }
 0x973   :  { %2914 = vrsqrt.f32 %v2349_v15  ;;  %v2348_v52 = vmul.f32 0.03125, %v2346_v19 }
 0x975   :  { %v2350_v55 = vadd.f32 1e-06, %v2348_v52 }
 0x977   :  { %2916 = vrsqrt.f32 %v2350_v55 }
 0x97d   :  { %v2915_v56 = vpop.eup %2914 }
 0x97e   :  { %v2353_v2 = vmul.f32 %v2915_v56, %v2337_v40 }
 0x980   :  { %2765 = vmatprep.mubr.msk.f32.mxu1 %vm105_vm0, %v2353_v2 }
 0x981   :  { %v2917_v60 = vpop.eup %2916 }
 0x982   :  { %v2354_v53 = vmul.f32 %v2917_v60, %v2338_v25 }
 0x984   :  { %2766 = vmatmul.mubr.msk.f32.vlgmr.msra.gmra.mrb[12].mxu1 %vm105_vm0, %v2354_v53 }
 0xa57   :  { %v2767_v10 = vpop.f32.mrb[12].mxu1 }
 0xa58   :  { %v2437_v50 = vadd.f32 %v2767_v10, %v2611_v61  ;;  %v2431_v11 = vpop.f32.mrb[13].mxu1 }
 0xa59   :  { %v2432_v32 = vadd.f32 %v2611_v61, %v2431_v11 }
 0xa5a   :  { %v2615_v33 = vmul.f32 -1.442695, %v2437_v50 }
 0xa5b   :  { %v2614_v24 = vmul.f32 -1.442695, %v2432_v32 }
 0xa5c   :  { %2918 = vpow2.f32 %v2615_v33 }
 0xa5d   :  { %2920 = vpow2.f32 %v2614_v24 }
 0xa66   :  { %v2919_v34 = vpop.eup %2918 }
 0xa67   :  { %v2921_v35 = vpop.eup %2920  ;;  %v2447_v26 = vadd.f32 1.0, %v2919_v34 }
 0xa68   :  { %v2446_v12 = vadd.f32 1.0, %v2921_v35 }
 0xa69   :  { %2922 = vrcp.f32 %v2447_v26 }
 0xa6a   :  { %2924 = vrcp.f32 %v2446_v12 }
 0xa73   :  { %v2923_v20 = vpop.eup %2922 }
 0xa74   :  { %v2925_v54 = vpop.eup %2924  ;;  %v2453_v22 = vmul.f32 %v2923_v20, %v2437_v50 }
 0xa75   :  { %v2452_v21 = vmul.f32 %v2925_v54, %v2432_v32 }
 0xa77   :  { %2784 = vmatprep.mubr.msk.f32.mxu0 %vm2458_vm5, %v2452_v21 }
 0xa78   :  { %2785 = vmatmul.mubr.msk.f32.vlgmr.msra.gmra.mrb[8].mxu0 %vm2458_vm5, %v2453_v22 }
 0xb4b   :  { %v2786_v5 = vpop.f32.mrb[8].mxu0 }
 0xb4c   :  { %v2537_v17 = vadd.f32 %v2786_v5, %v2616_v6  ;;  %v2531_v4 = vpop.f32.mrb[9].mxu0 }
 0xb4d   :  { %v2532_v23 = vadd.f32 %v2616_v6, %v2531_v4 }
 0xb4e   :  { %v2541_v16 = vadd.f32 %v2537_v17, %v3530_v27 }
 0xb4f   :  { %v2540_v7 = vadd.f32 %v2532_v23, %v3532_v28 }
 0xb50   :  { %2543 = vst.msk [vmem:[#allocation10 + $0x8] sm:$0xff] %vm105_vm0, %v2541_v16 }
 0xb51   :  { %2542 = vst.msk [vmem:[#allocation10] sm:$0xff] %vm105_vm0, %v2540_v7 }
 0xb52   :  { %3027 = shalt.err (!%p3024_p8)
}
 0xb53   :  { %s3028_s0 = scalar_lea.hbm %s3567_s4, 256 }
 0xb54   :  { %p3029_p9 = scmp.ne.s32.totalorder %s3567_s4, %s3028_s0  ;;  %p3032_p10 = scmp.lt.u32.totalorder %s3028_s0, %s3567_s4 }
 0xb56   :  { %p3034_p11 = pnand %p3032_p10, %p3029_p9 }
 0xb58   :  { %3037 = shalt.err (!%p3034_p11)
}
 0xb59   :  { %2555 = dma.vmem_to_hbm [thread:$0]  %s2550_s22, 256, %s3567_s4, [#allocation4], %s3048_s27, %s3048_s27, %s3049_s28  }
 0xb5a   :  { %3044 = dma.done.wait [#allocation4], 256  }
 0xb5b   :  { %3045 = vsyncadd [#allocation4], 4294967040 }
 0xb5c   :  { %2559 = vsyncpa [#allocation3], 1 }
 0xb5d   :  { %2560 = vsyncpa [#allocation6], 1 }
 0xb5e   :  { %2561 = vsyncpa [#allocation9], 1 }
 0xb5f   :  { %2562 = vsyncpa [#allocation4], 1 }

</bundles_post_ra>
